<compile_context>
chip_gen: v7x
topology: tpu7x:2x2x1
jax: 0.10.0
libtpu: 0.0.40
codegen_flags: <defaults>
</compile_context>

<pallas_src>
import functools

import jax
import jax.numpy as jnp
from jax import lax
from jax.experimental import pallas as pl
from jax.experimental.pallas import tpu as pltpu


def _round_up(n, m):
    return ((n + m - 1) // m) * m


def _vmem_budget_bytes():
    """Generation-aware VMEM budget: ~75% of physical VMEM.

    -> ~96 MiB on v5e/v6e (128 MiB), ~48 MiB on v7x (64 MiB).
    """
    cap = 64 * 1024 * 1024  # conservative fallback: v7x physical VMEM
    try:
        info = pltpu.get_tpu_info()
        cap = int(getattr(info, "vmem_capacity_bytes", cap)) or cap
    except Exception:
        pass
    return (cap // 4) * 3


def _plan_tiling(M, L, itemsize, budget):
    """Pick (tm, Mp, Lp): largest row tile whose working set fits the budget."""
    Lp = _round_up(max(L, 128), 128)
    base = 4 * Lp * Lp          # resident Gram accumulator (f32)
    base += 4 * 4 * Lp          # b accumulator + double-buffered v output (f32)
    slack = 2 << 20             # headroom for compiler-internal scratch
    tm_cap = max(128, min(1024, _round_up(M, 128)))
    tm = None
    for cand in (1024, 512, 256, 128):
        if cand > tm_cap:
            continue
        mp = _round_up(max(M, cand), cand)
        need = (base
                + 2 * cand * Lp * itemsize    # double-buffered H row tile
                + 2 * mp * itemsize           # resident x (worst-case 2 bufs)
                + slack)
        if need <= budget:
            tm = cand
            break
    if tm is None:
        # TODO(synk): blocked-Gram fallback (G in HBM, tiled CG matvec) for
        # problems whose resident Gram does not fit this generation's VMEM.
        raise ValueError(
            f"Problem too large for resident-Gram CG on this TPU: L={L} "
            f"(Gram needs {4 * Lp * Lp / 2**20:.1f} MiB), VMEM budget "
            f"{budget / 2**20:.1f} MiB")
    Mp = _round_up(max(M, tm), tm)
    return tm, Mp, Lp


# --------------------------------------------------------------------------
# Kernel 1: accumulate G = H^T H (+ lam I) and b = H^T x over M row-tiles,
#           then run the CG solve on the resident Gram at the last grid step.
# --------------------------------------------------------------------------
def _gram_cg_kernel(H_ref, x_ref, v_ref, G_acc, b_acc, *, n_iter, lam, tm):
    i = pl.program_id(0)
    nsteps = pl.num_programs(0)

    @pl.when(i == 0)
    def _init():
        G_acc[...] = jnp.zeros_like(G_acc)
        b_acc[...] = jnp.zeros_like(b_acc)
        v_ref[...] = jnp.zeros_like(v_ref)

    H_t = H_ref[...]                              # (tm, Lp) native stream dtype
    off = pl.multiple_of(i * tm, tm)
    x_t = x_ref[:, pl.ds(off, tm)]                # (1, tm) from resident x

    # G += H_t^T @ H_t : contraction over dim 0 of both operands lowers to a
    # transposed-operand MXU matmul (no explicit XLU transpose of the tile).
    G_acc[...] += lax.dot_general(
        H_t, H_t, (((0,), (0,)), ((), ())),
        preferred_element_type=jnp.float32)
    # b += x_t @ H_t : canonical (1,tm)x(tm,Lp) matvec, f32 accumulate.
    b_acc[...] += lax.dot_general(
        x_t, H_t, (((1,), (0,)), ((), ())),
        preferred_element_type=jnp.float32)

    @pl.when(i == nsteps - 1)
    def _solve():
        Lp = G_acc.shape[0]
        G = G_acc[...]
        if lam != 0.0:  # lam is a static Python float
            row = lax.broadcasted_iota(jnp.int32, (Lp, Lp), 0)
            col = lax.broadcasted_iota(jnp.int32, (Lp, Lp), 1)
            G = G + jnp.where(row == col, jnp.float32(lam), jnp.float32(0.0))
        b = b_acc[...]                             # (1, Lp) f32

        eps = jnp.float32(1e-30)
        v0 = jnp.zeros_like(b)
        rs0 = jnp.sum(b * b, keepdims=True)        # (1, 1)

        def body(_, carry):
            v, r, p, rs = carry
            # Single canonical (1,Lp)x(Lp,Lp) matvec per iteration.
            Gp = lax.dot_general(p, G, (((1,), (0,)), ((), ())),
                                 preferred_element_type=jnp.float32)
            alpha = rs / (jnp.sum(p * Gp, keepdims=True) + eps)
            v = v + alpha * p
            r = r - alpha * Gp
            rs_new = jnp.sum(r * r, keepdims=True)
            beta = rs_new / (rs + eps)
            p = r + beta * p
            return v, r, p, rs_new

        # Each iteration is already a full MXU matvec (hundreds+ cycles):
        # keep the loop rolled to avoid instruction-memory bloat.
        v, _, _, _ = lax.fori_loop(0, n_iter, body, (v0, b, b, rs0))
        v_ref[...] = v.astype(v_ref.dtype)


# --------------------------------------------------------------------------
# Kernel 2: epilogue y_est = H v, tiled over M (independent -> "parallel",
#           lane-dense (1, tm) output).
# TODO(synk): for very large L the 1-row MXU matvec here is weight-reload
# bound; a VPU broadcast-multiply + lane-reduce variant would be cheaper.
# --------------------------------------------------------------------------
def _yest_kernel(H_ref, v_ref, y_ref):
    y_ref[...] = lax.dot_general(
        v_ref[...], H_ref[...], (((1,), (1,)), ((), ())),
        preferred_element_type=jnp.float32).astype(y_ref.dtype)


def _cgm_solve_pallas(n_iter_cgm, x_p, H_p, lambda_tikhonov, tm, vmem_limit):
    Mp, Lp = H_p.shape
    n_tiles = Mp // tm
    kernel = functools.partial(_gram_cg_kernel,
                               n_iter=int(n_iter_cgm),
                               lam=float(lambda_tikhonov),
                               tm=tm)
    return pl.pallas_call(
        kernel,
        out_shape=jax.ShapeDtypeStruct((1, Lp), jnp.float32),
        grid_spec=pltpu.PrefetchScalarGridSpec(
            num_scalar_prefetch=0,
            grid=(n_tiles,),
            in_specs=[pl.BlockSpec((tm, Lp), lambda i: (i, 0)),   # H row tile
                      pl.BlockSpec((1, Mp), lambda i: (0, 0))],   # x resident
            out_specs=pl.BlockSpec((1, Lp), lambda i: (0, 0)),    # v resident
            scratch_shapes=[pltpu.VMEM((Lp, Lp), jnp.float32),    # G accumulator
                            pltpu.VMEM((1, Lp), jnp.float32)]),   # b accumulator
        compiler_params=pltpu.CompilerParams(
            dimension_semantics=("arbitrary",),    # reduction over M tiles
            vmem_limit_bytes=int(vmem_limit)),
    )(H_p, x_p)


def _yest_pallas(H_p, v_p, tm, vmem_limit):
    Mp, Lp = H_p.shape
    n_tiles = Mp // tm
    return pl.pallas_call(
        _yest_kernel,
        out_shape=jax.ShapeDtypeStruct((1, Mp), jnp.float32),
        grid_spec=pltpu.PrefetchScalarGridSpec(
            num_scalar_prefetch=0,
            grid=(n_tiles,),
            in_specs=[pl.BlockSpec((tm, Lp), lambda i: (i, 0)),   # H row tile
                      pl.BlockSpec((1, Lp), lambda i: (0, 0))],   # v resident
            out_specs=pl.BlockSpec((1, tm), lambda i: (0, i))),   # lane-dense y
        compiler_params=pltpu.CompilerParams(
            dimension_semantics=("parallel",),     # independent tiles -> megacore
            vmem_limit_bytes=int(vmem_limit)),
    )(H_p, v_p)


def module_cgm_forward(n_iter_cgm, x, H_estimate, v_truth, q_truth, L,
                       dtype=jnp.float32, lambda_tikhonov=0.0,
                       stream_dtype=None):
    """Mirror of ModuleCGM.forward.

    Returns [v_cgm, residual, mae_target, ce_target, mae, ce,
             mse_v_t_target, mse_v_t, mae_target_f, ce_target_f, mae_f, ce_f].

    stream_dtype: dtype in which H / x are streamed through the kernels
    (default: dtype). Set to jnp.bfloat16 to halve HBM traffic; the Gram
    accumulation and the CG solve stay in float32 regardless.
    """
    M = H_estimate.shape[0]
    assert H_estimate.shape[1] == L

    sdt = jnp.dtype(dtype if stream_dtype is None else stream_dtype)
    budget = _vmem_budget_bytes()
    tm, Mp, Lp = _plan_tiling(M, L, sdt.itemsize, budget)

    # Avoid materializing a padded HBM copy of H when shapes already align.
    if Mp == M and Lp == L:
        H_p = H_estimate.astype(sdt)
        x_p = x.astype(sdt).reshape(1, Mp)
    else:
        # Zero padding is exact for CG: padded components of b/r/p stay zero.
        H_p = jnp.zeros((Mp, Lp), sdt).at[:M, :L].set(H_estimate.astype(sdt))
        x_p = jnp.zeros((1, Mp), sdt).at[0, :M].set(x.astype(sdt))

    v_p = _cgm_solve_pallas(n_iter_cgm, x_p, H_p, lambda_tikhonov, tm, budget)
    y_p = _yest_pallas(H_p, v_p.astype(sdt), tm, budget)

    v_cgm = v_p[0, :L]
    y_est = y_p[0, :M]

    # --- metrics in f32 against the ORIGINAL (un-quantized) truths ----------
    # TODO(synk): torch_cgm metric conventions (norm vs mean) are reconstructed.
    eps = jnp.float32(1e-30)
    xf = x.astype(jnp.float32)
    vtf = v_truth.astype(jnp.float32)
    qtf = q_truth.astype(jnp.float32)
    vf = v_cgm.astype(jnp.float32)
    yf = y_est.astype(jnp.float32)

    d_res = yf - xf
    d_q = yf - qtf
    d_v = vf - vtf

    residual = jnp.sqrt(jnp.sum(d_res * d_res))
    mae_target = jnp.mean(jnp.abs(d_q))
    ce_target = jnp.sum(d_q * d_q) / (jnp.sum(qtf * qtf) + eps)
    mae = jnp.mean(jnp.abs(d_v))
    ce = jnp.sum(d_v * d_v) / (jnp.sum(vtf * vtf) + eps)
    mse_v_t_target = jnp.mean(d_q * d_q)
    mse_v_t = jnp.mean(d_v * d_v)

    # TODO(synk): FFT has no Pallas TPU primitive; spectral metrics are
    # computed in plain JAX on the kernel-produced v_cgm / H v_cgm.
    Vf = jnp.abs(jnp.fft.rfft(vf))
    Vtf = jnp.abs(jnp.fft.rfft(vtf))
    Yf = jnp.abs(jnp.fft.rfft(yf))
    Qtf = jnp.abs(jnp.fft.rfft(qtf))

    d_qf = Yf - Qtf
    d_vf = Vf - Vtf
    mae_target_f = jnp.mean(jnp.abs(d_qf))
    ce_target_f = jnp.sum(d_qf * d_qf) / (jnp.sum(Qtf * Qtf) + eps)
    mae_f = jnp.mean(jnp.abs(d_vf))
    ce_f = jnp.sum(d_vf * d_vf) / (jnp.sum(Vtf * Vtf) + eps)

    return [v_cgm.astype(dtype), residual, mae_target, ce_target, mae, ce,
            mse_v_t_target, mse_v_t, mae_target_f, ce_target_f, mae_f, ce_f]


# --------------------------------------------------------------------------
# Pure-JAX reference (same Gram-form CG) for a correctness cross-check.
# --------------------------------------------------------------------------
def _cgm_reference(n_iter, x, H, lam):
    H = H.astype(jnp.float32)
    x = x.astype(jnp.float32)
    G = H.T @ H + jnp.float32(lam) * jnp.eye(H.shape[1], dtype=jnp.float32)
    b = H.T @ x
    v = jnp.zeros_like(b)
    r = b
    p = r
    rs = jnp.dot(r, r)
    eps = jnp.float32(1e-30)
    for _ in range(int(n_iter)):
        Gp = G @ p
        alpha = rs / (jnp.dot(p, Gp) + eps)
        v = v + alpha * p
        r = r - alpha * Gp
        rs_new = jnp.dot(r, r)
        beta = rs_new / (rs + eps)
        p = r + beta * p
        rs = rs_new
    return v


if __name__ == "__main__":
    # Small deterministic problem (ragged M/L -> exercises padding + multi-tile).
    M, L = 300, 200
    n_iter_cgm = 16
    lambda_tikhonov = 1e-3
    dtype = jnp.float32

    key = jax.random.PRNGKey(0)
    k_h, k_v, k_n = jax.random.split(key, 3)
    H_estimate = (jax.random.normal(k_h, (M, L), dtype=jnp.float32)
                  / jnp.sqrt(jnp.float32(L)))
    v_truth = jax.random.normal(k_v, (L,), dtype=jnp.float32)
    q_truth = H_estimate @ v_truth                       # clean target signal
    x = q_truth + 0.01 * jax.random.normal(k_n, (M,), dtype=jnp.float32)

    v_ref = _cgm_reference(n_iter_cgm, x, H_estimate, lambda_tikhonov)
    ref_norm = float(jnp.linalg.norm(v_ref)) + 1e-30

    # --- f32 streaming path (default): tight tolerance ----------------------
    outs = module_cgm_forward(n_iter_cgm, x, H_estimate, v_truth, q_truth, L,
                              dtype=dtype, lambda_tikhonov=lambda_tikhonov)
    outs = [jax.block_until_ready(o) for o in outs]
    v_cgm = outs[0]
    assert v_cgm.shape == (L,)
    assert all(bool(jnp.all(jnp.isfinite(jnp.asarray(o)))) for o in outs)
    rel_err = float(jnp.linalg.norm(v_cgm.astype(jnp.float32) - v_ref)) / ref_norm
    assert rel_err < 1e-4, f"f32 reference mismatch: rel_err={rel_err}"

    # --- bf16 streaming path (halves HBM traffic): loose tolerance ----------
    outs_bf = module_cgm_forward(n_iter_cgm, x, H_estimate, v_truth, q_truth, L,
                                 dtype=dtype, lambda_tikhonov=lambda_tikhonov,
                                 stream_dtype=jnp.bfloat16)
    v_bf = jax.block_until_ready(outs_bf[0])
    assert bool(jnp.all(jnp.isfinite(v_bf)))
    rel_err_bf = float(jnp.linalg.norm(v_bf.astype(jnp.float32) - v_ref)) / ref_norm
    assert rel_err_bf < 3e-2, f"bf16 reference mismatch: rel_err={rel_err_bf}"

    print("KERNEL_OK")
</pallas_src>

<mosaic_0001>
module attributes {stable_mosaic.version = 11 : i64} {
  func.func @_gram_cg_kernel(%arg0: i32, %arg1: memref<256x256xf32, #tpu.memory_space<vmem>>, %arg2: memref<1x512xf32, #tpu.memory_space<vmem>>, %arg3: memref<1x256xf32, #tpu.memory_space<vmem>>, %arg4: memref<256x256xf32, #tpu.memory_space<vmem>>, %arg5: memref<1x256xf32, #tpu.memory_space<vmem>>) attributes {dimension_semantics = [#tpu.dimension_semantics<arbitrary>], iteration_bounds = array<i64: 2>, scalar_prefetch = 0 : i64, scratch_operands = 2 : i64, tpu.core_type = #tpu.core_type<tc>, window_params = [{transform_indices = @transform_0, window_bounds = array<i64: 256, 256>}, {pipeline_mode = #tpu.pipeline_mode<synchronous>, transform_indices = @transform_1, window_bounds = array<i64: 1, 512>}, {pipeline_mode = #tpu.pipeline_mode<synchronous>, transform_indices = @transform_2, window_bounds = array<i64: 1, 256>}]} {
    %c0_i32 = arith.constant 0 : i32
    %0 = arith.cmpi eq, %arg0, %c0_i32 : i32
    %1 = arith.extui %0 : i1 to i32
    %c0_i32_0 = arith.constant 0 : i32
    %2 = arith.cmpi ne, %1, %c0_i32_0 : i32
    scf.if %2 {
      %cst_13 = arith.constant 0.000000e+00 : f32
      %19 = vector.broadcast %cst_13 : f32 to vector<256x256xf32>
      %c0_14 = arith.constant 0 : index
      %c0_15 = arith.constant 0 : index
      %20 = vector.load %arg4[%c0_14, %c0_15] : memref<256x256xf32, #tpu.memory_space<vmem>>, vector<256x256xf32>
      tpu.vector_store %arg4[%c0_14, %c0_15], %19 {strides = array<i32>} : memref<256x256xf32, #tpu.memory_space<vmem>>, vector<256x256xf32>,
      %cst_16 = arith.constant 0.000000e+00 : f32
      %21 = vector.broadcast %cst_16 : f32 to vector<1x256xf32>
      %c0_17 = arith.constant 0 : index
      %c0_18 = arith.constant 0 : index
      %22 = vector.load %arg5[%c0_17, %c0_18] : memref<1x256xf32, #tpu.memory_space<vmem>>, vector<1x256xf32>
      tpu.vector_store %arg5[%c0_17, %c0_18], %21 {strides = array<i32>} : memref<1x256xf32, #tpu.memory_space<vmem>>, vector<1x256xf32>,
      %cst_19 = arith.constant 0.000000e+00 : f32
      %23 = vector.broadcast %cst_19 : f32 to vector<1x256xf32>
      %c0_20 = arith.constant 0 : index
      %c0_21 = arith.constant 0 : index
      %24 = vector.load %arg3[%c0_20, %c0_21] : memref<1x256xf32, #tpu.memory_space<vmem>>, vector<1x256xf32>
      tpu.vector_store %arg3[%c0_20, %c0_21], %23 {strides = array<i32>} : memref<1x256xf32, #tpu.memory_space<vmem>>, vector<1x256xf32>,
    } else {
    }
    %c0 = arith.constant 0 : index
    %c0_1 = arith.constant 0 : index
    %3 = vector.load %arg1[%c0, %c0_1] : memref<256x256xf32, #tpu.memory_space<vmem>>, vector<256x256xf32>
    %c256_i32 = arith.constant 256 : i32
    %4 = arith.muli %arg0, %c256_i32 : i32
    %5 = tpu.assume_multiple %4, 256 : i32
    %c0_2 = arith.constant 0 : index
    %6 = arith.index_cast %5 : i32 to index
    %7 = vector.load %arg2[%c0_2, %6] : memref<1x512xf32, #tpu.memory_space<vmem>>, vector<1x256xf32>
    %c0_3 = arith.constant 0 : index
    %c0_4 = arith.constant 0 : index
    %8 = vector.load %arg4[%c0_3, %c0_4] : memref<256x256xf32, #tpu.memory_space<vmem>>, vector<256x256xf32>
    %cst = arith.constant dense<0.000000e+00> : vector<256x256xf32>
    %9 = tpu.matmul %3, %3, %cst {dimension_numbers = #tpu.dot_dimension_numbers<[0], [0], [1], [1], [0, 1, 1, 1], [], []>} : vector<256x256xf32>, vector<256x256xf32>, vector<256x256xf32> -> vector<256x256xf32>
    %10 = arith.addf %8, %9 : vector<256x256xf32>
    %c0_5 = arith.constant 0 : index
    %c0_6 = arith.constant 0 : index
    %11 = vector.load %arg4[%c0_5, %c0_6] : memref<256x256xf32, #tpu.memory_space<vmem>>, vector<256x256xf32>
    tpu.vector_store %arg4[%c0_5, %c0_6], %10 {strides = array<i32>} : memref<256x256xf32, #tpu.memory_space<vmem>>, vector<256x256xf32>,
    %c0_7 = arith.constant 0 : index
    %c0_8 = arith.constant 0 : index
    %12 = vector.load %arg5[%c0_7, %c0_8] : memref<1x256xf32, #tpu.memory_space<vmem>>, vector<1x256xf32>
    %cst_9 = arith.constant dense<0.000000e+00> : vector<1x256xf32>
    %13 = tpu.matmul %7, %3, %cst_9 {dimension_numbers = #tpu.dot_dimension_numbers<[1], [0], [0], [1], [0, 0, 1, 1], [], []>} : vector<1x256xf32>, vector<256x256xf32>, vector<1x256xf32> -> vector<1x256xf32>
    %14 = arith.addf %12, %13 : vector<1x256xf32>
    %c0_10 = arith.constant 0 : index
    %c0_11 = arith.constant 0 : index
    %15 = vector.load %arg5[%c0_10, %c0_11] : memref<1x256xf32, #tpu.memory_space<vmem>>, vector<1x256xf32>
    tpu.vector_store %arg5[%c0_10, %c0_11], %14 {strides = array<i32>} : memref<1x256xf32, #tpu.memory_space<vmem>>, vector<1x256xf32>,
    %c1_i32 = arith.constant 1 : i32
    %16 = arith.cmpi eq, %arg0, %c1_i32 : i32
    %17 = arith.extui %16 : i1 to i32
    %c0_i32_12 = arith.constant 0 : i32
    %18 = arith.cmpi ne, %17, %c0_i32_12 : i32
    scf.if %18 {
      %c0_13 = arith.constant 0 : index
      %c0_14 = arith.constant 0 : index
      %19 = vector.load %arg4[%c0_13, %c0_14] : memref<256x256xf32, #tpu.memory_space<vmem>>, vector<256x256xf32>
      %20 = tpu.iota {dimensions = array<i32: 0>} : vector<256x256xi32>
      %21 = tpu.iota {dimensions = array<i32: 1>} : vector<256x256xi32>
      %22 = arith.cmpi eq, %20, %21 : vector<256x256xi32>
      %cst_15 = arith.constant 1.000000e-03 : f32
      %cst_16 = arith.constant 0.000000e+00 : f32
      %23 = vector.broadcast %cst_15 : f32 to vector<256x256xf32>
      %24 = vector.broadcast %cst_16 : f32 to vector<256x256xf32>
      %25 = arith.select %22, %23, %24 : vector<256x256xi1>, vector<256x256xf32>
      %26 = arith.addf %19, %25 : vector<256x256xf32>
      %c0_17 = arith.constant 0 : index
      %c0_18 = arith.constant 0 : index
      %27 = vector.load %arg5[%c0_17, %c0_18] : memref<1x256xf32, #tpu.memory_space<vmem>>, vector<1x256xf32>
      %cst_19 = arith.constant 0.000000e+00 : f32
      %28 = vector.broadcast %cst_19 : f32 to vector<1x256xf32>
      %29 = arith.mulf %27, %27 : vector<1x256xf32>
      %30 = vector.shape_cast %29 : vector<1x256xf32> to vector<1x1x256xf32>
      %cst_20 = arith.constant dense<0.000000e+00> : vector<1xf32>
      %31 = vector.multi_reduction <add>, %30, %cst_20 [1, 2] : vector<1x1x256xf32> to vector<1xf32>
      %32 = vector.shape_cast %31 : vector<1xf32> to vector<1x1x1xf32>
      %33 = vector.extract %32[0, 0, 0] : f32 from vector<1x1x1xf32>
      %34 = vector.broadcast %33 : f32 to vector<1x1xf32>
      %cst_21 = arith.constant 1.000000e-30 : f32
      %c0_i32_22 = arith.constant 0 : i32
      %c16_i32 = arith.constant 16 : i32
      %35 = arith.addi %c0_i32_22, %c16_i32 : i32
      %c1_i32_23 = arith.constant 1 : i32
      %36:4 = scf.for %arg6 = %c0_i32_22 to %35 step %c1_i32_23 iter_args(%arg7 = %28, %arg8 = %27, %arg9 = %27, %arg10 = %34) -> (vector<1x256xf32>, vector<1x256xf32>, vector<1x256xf32>, vector<1x1xf32>)  : i32 {
        %cst_26 = arith.constant dense<0.000000e+00> : vector<1x256xf32>
        %38 = tpu.matmul %arg9, %26, %cst_26 {dimension_numbers = #tpu.dot_dimension_numbers<[1], [0], [0], [1], [0, 0, 1, 1], [], []>} : vector<1x256xf32>, vector<256x256xf32>, vector<1x256xf32> -> vector<1x256xf32>
        %39 = arith.mulf %arg9, %38 : vector<1x256xf32>
        %40 = vector.shape_cast %39 : vector<1x256xf32> to vector<1x1x256xf32>
        %cst_27 = arith.constant dense<0.000000e+00> : vector<1xf32>
        %41 = vector.multi_reduction <add>, %40, %cst_27 [1, 2] : vector<1x1x256xf32> to vector<1xf32>
        %42 = vector.shape_cast %41 : vector<1xf32> to vector<1x1x1xf32>
        %43 = vector.extract %42[0, 0, 0] : f32 from vector<1x1x1xf32>
        %44 = vector.broadcast %43 : f32 to vector<1x1xf32>
        %45 = vector.broadcast %cst_21 : f32 to vector<1x1xf32>
        %46 = arith.addf %44, %45 : vector<1x1xf32>
        %47 = arith.divf %arg10, %46 : vector<1x1xf32>
        %48 = vector.broadcast %47 : vector<1x1xf32> to vector<1x256xf32>
        %49 = arith.mulf %48, %arg9 : vector<1x256xf32>
        %50 = arith.addf %arg7, %49 : vector<1x256xf32>
        %51 = vector.broadcast %47 : vector<1x1xf32> to vector<1x256xf32>
        %52 = arith.mulf %51, %38 : vector<1x256xf32>
        %53 = arith.subf %arg8, %52 : vector<1x256xf32>
        %54 = arith.mulf %53, %53 : vector<1x256xf32>
        %55 = vector.shape_cast %54 : vector<1x256xf32> to vector<1x1x256xf32>
        %cst_28 = arith.constant dense<0.000000e+00> : vector<1xf32>
        %56 = vector.multi_reduction <add>, %55, %cst_28 [1, 2] : vector<1x1x256xf32> to vector<1xf32>
        %57 = vector.shape_cast %56 : vector<1xf32> to vector<1x1x1xf32>
        %58 = vector.extract %57[0, 0, 0] : f32 from vector<1x1x1xf32>
        %59 = vector.broadcast %58 : f32 to vector<1x1xf32>
        %60 = vector.broadcast %cst_21 : f32 to vector<1x1xf32>
        %61 = arith.addf %arg10, %60 : vector<1x1xf32>
        %62 = arith.divf %59, %61 : vector<1x1xf32>
        %63 = vector.broadcast %62 : vector<1x1xf32> to vector<1x256xf32>
        %64 = arith.mulf %63, %arg9 : vector<1x256xf32>
        %65 = arith.addf %53, %64 : vector<1x256xf32>
        scf.yield %50, %53, %65, %59 : vector<1x256xf32>, vector<1x256xf32>, vector<1x256xf32>, vector<1x1xf32>
      }
      %c0_24 = arith.constant 0 : index
      %c0_25 = arith.constant 0 : index
      %37 = vector.load %arg3[%c0_24, %c0_25] : memref<1x256xf32, #tpu.memory_space<vmem>>, vector<1x256xf32>
      tpu.vector_store %arg3[%c0_24, %c0_25], %36#0 {strides = array<i32>} : memref<1x256xf32, #tpu.memory_space<vmem>>, vector<1x256xf32>,
    } else {
    }
    return
  }
  func.func @transform_0(%arg0: i32) -> (i32, i32) {
    %c0_i32 = arith.constant 0 : i32
    %c0_i32_0 = arith.constant 0 : i32
    return %arg0, %c0_i32 : i32, i32
  }
  func.func @transform_1(%arg0: i32) -> (i32, i32) {
    %c0_i32 = arith.constant 0 : i32
    %c0_i32_0 = arith.constant 0 : i32
    %c0_i32_1 = arith.constant 0 : i32
    return %c0_i32, %c0_i32_0 : i32, i32
  }
  func.func @transform_2(%arg0: i32) -> (i32, i32) {
    %c0_i32 = arith.constant 0 : i32
    %c0_i32_0 = arith.constant 0 : i32
    %c0_i32_1 = arith.constant 0 : i32
    return %c0_i32, %c0_i32_0 : i32, i32
  }
}

</mosaic_0001>

<bundles_post_ra>
// kernel: tpu_custom_call.1
= control target key start
LH: loop header
LB: loop body
LE: loop exit
PB: predicated region body
PF: predicated region fallthrough
CT: control target
= control target key end

     0   :  { %7 = vsyncpa [#allocation5], 0  ;;  %s3394_s0 = inlined_call_operand.hbm [shape: f32[512,256], index: 0, kind: input, shape index: {}]   ;;  %s3395_s1 = inlined_call_operand.hbm [shape: f32[1,512], index: 1, kind: input, shape index: {}]   ;;  %s3396_s2 = inlined_call_operand.hbm [shape: f32[1,256], index: 2, kind: output, shape index: {}]  }
   0x1   :  { %9 = vsyncpa [#allocation5 + $0x1], 0 }
   0x2   :  { %10 = vsyncpa [#allocation8], 0 }
   0x3   :  { %11 = vsyncpa [#allocation6], 0  ;;  %s2331_s9 = smov 0   ;;  %s2333_s10 = smov 0  }
   0x4   :  { %s2335_s11 = smov 0   ;;  %s2337_s12 = smov 0  }
   0x5 LB: > { %s2350_s13 = sadd.s32 4294967295, %s2286_s12   ;;  %s2353_s14 = sadd.s32 1, %s2286_s12   ;;  %s2286_s12 = sphi %s2337_s12, %s3509_s12   ;;  %s2282_s11 = sphi %s2335_s11, %s3508_s11   ;;  %s2278_s10 = sphi %s2333_s10, %s3507_s10   ;;  %s2274_s9 = sphi %s2331_s9, %s3506_s9  }
   0x6   : > { %s21_s15 = ssub.s32 %s2286_s12, %s2353_s14  ;;  %s24_s16 = sadd.s32 1, %s2282_s11 }
   0x7   : > { %p22_p0 = scmp.eq.s32.totalorder %s21_s15, 0  ;;  %p31_p1 = scmp.ne.s32.totalorder %s2282_s11, %s2278_s10 }
   0x8   : > { %p32_p2 = scmp.eq.s32.totalorder %s2286_s12, 0  ;;  %p37_p3 = scmp.ne.s32.totalorder %s2278_s10, %s2274_s9 }
   0x9   : > { %s2363_s17 = scalar_select %p22_p0, %s2282_s11, %s24_s16  }
   0xa   : > { %p2365_p4 = por %p32_p2, %p31_p1  ;;  %p3397_p5 = scmp.eq.s32.totalorder %s2350_s13, 0 }
   0xb   : > { %p1593_p6 = scmp.ge.s32.totalorder %s2286_s12, 1  ;;  %p90_p7 = scmp.lt.s32.totalorder %s2286_s12, 3 }
   0xc   : > { %p2374_p8 = por %p3397_p5, %p37_p3  ;;  %s2308_s21 = smov [#allocation7]  }
   0xd   : > { %p2379_p10 = pnand %p1593_p6, %p90_p7  ;;  %s103_s22 = sshll.u32 %s2308_s21, 4  ;;  %s104_s22 = int_to_ptr.vmem [resolvable:$true] %s103_s22 }
   0xe   : > { %s3405_s19 = scalar_select %p2374_p8, 1, 0 }
   0xf   : > { %s3406_s20 = scalar_select %p2379_p10, 1, 0 }
  0x10   : > { %p1820_p11 = pneg %p2379_p10  ;;  %p1829_p12 = scmp.lt.s32.totalorder %s2286_s12, 2 }
  0x11   : > { %s114_s23 = sand.u32 1, %s2282_s11   ;;  %s2140_s29 = scalar_lea.hbm %s3395_s1, 64 }
  0x12   : > { %p2389_p13 = pnand %p1820_p11, %p3397_p5  ;;  %p2395_p0 = pnand %p1829_p12, %p2365_p4 }
  0x13   : > { %s1596_s26 = sshll.u32 %s114_s23, 9  ;;  %p2141_p1 = scmp.ne.s32.totalorder %s3395_s1, %s2140_s29 }
  0x14   : > { %s3408_s25 = scalar_select %p2395_p0, 1, 0 }
  0x15   : > { %p2142_p2 = pneg %p2389_p13  ;;  %p2147_p4 = scmp.lt.u32.totalorder %s2140_s29, %s3395_s1 }
  0x17   : > { %p2143_p3 = pnand %p2142_p2, %p2141_p1 }
  0x19   : > { %p2144_p6 = pneg %p2143_p3 }
  0x1b   : > { %p2149_p7 = pnand %p2147_p4, %p2144_p6 }
  0x1d   : > { %2152 = shalt.err (!%p2149_p7)
}
  0x1e   : > { %s2153_s6 = scalar_lea.vmem %s104_s22, 64  ;;  %p2161_p5 = scmp.lt.s32.totalorder %s104_s22, %s104_s22 }
  0x1f   : > { %p2154_p11 = scmp.ne.s32.totalorder %s104_s22, %s2153_s6  ;;  %p2162_p8 = scmp.lt.s32.totalorder %s2153_s6, %s2153_s6 }
  0x21   : > { %p2156_p12 = pnand %p2154_p11, %p2142_p2  ;;  %p2163_p10 = por %p2162_p8, %p2161_p5 }
  0x23   : > { %p2157_p9 = pneg %p2156_p12 }
  0x25   : > { %p2164_p0 = pnand %p2163_p10, %p2157_p9 }
  0x27   : > { %2167 = shalt.err (!%p2164_p0)
}
  0x28   : > { %1823 = dma.hbm_to_vmem [thread:$0]  (!%p2389_p13), %s3395_s1, 64, %s104_s22, [#allocation8]  }
  0x29   : > { %s1611_s9 = sshll.u32 %s2286_s12, 13  ;;  %s118_s21 = scalar_lea.vmem [#allocation4], %s1596_s26 }
  0x2a   : > { %s2419_s18 = scalar_lea.hbm %s3394_s0, %s1611_s9  ;;  %s126_s27 = sshll.u32 %s118_s21, 4  ;;  %s2421_s27 = int_to_ptr.vmem [resolvable:$true] %s126_s27 }
  0x2b   : > { %s2423_s24 = scalar_lea.sflag [#allocation5], %s114_s23  ;;  %s2168_s28 = scalar_lea.hbm %s2419_s18, 8192 }
  0x2c   : > { %p2169_p5 = scmp.ne.s32.totalorder %s2419_s18, %s2168_s28  ;;  %p3409_p8 = scmp.ne.s32.totalorder %s3408_s25, 0 }
  0x2d   : > { %s2173_s29 = scalar_lea.hbm %s3394_s0, 16384  ;;  %p2174_p0 = scmp.lt.u32.totalorder %s2419_s18, %s3394_s0 }
  0x2e   : > { %p2170_p9 = pneg %p3409_p8  ;;  %p2175_p1 = scmp.lt.u32.totalorder %s2173_s29, %s2168_s28 }
  0x2f   : > { %p2177_p3 = scmp.lt.u32.totalorder %s2168_s28, %s2419_s18 }
  0x30   : > { %p2171_p10 = pnand %p2170_p9, %p2169_p5  ;;  %p2176_p2 = por %p2175_p1, %p2174_p0 }
  0x32   : > { %p2172_p13 = pneg %p2171_p10  ;;  %p2178_p6 = por %p2177_p3, %p2176_p2 }
  0x34   : > { %p2179_p4 = pnand %p2178_p6, %p2172_p13 }
  0x36   : > { %2182 = shalt.err (!%p2179_p4)
}
  0x37   : > { %s2183_s23 = scalar_lea.vmem %s2421_s27, 8192  ;;  %s2309_s26 = smov [#allocation4]  }
  0x38   : > { %p2184_p7 = scmp.ne.s32.totalorder %s2421_s27, %s2183_s23  ;;  %s2188_s4 = sshll.u32 %s2309_s26, 4  ;;  %s2189_s4 = int_to_ptr.vmem [resolvable:$false] %s2188_s4 }
  0x39   : > { %s2190_s5 = scalar_lea.vmem %s2189_s4, 16384  ;;  %p2191_p5 = scmp.lt.s32.totalorder %s2421_s27, %s2189_s4 }
  0x3a   : > { %p2186_p11 = pnand %p2184_p7, %p2170_p9  ;;  %p2192_p10 = scmp.lt.s32.totalorder %s2190_s5, %s2183_s23 }
  0x3c   : > { %p2187_p12 = pneg %p2186_p11  ;;  %p2193_p0 = por %p2192_p10, %p2191_p5 }
  0x3e   : > { %p2194_p1 = pnand %p2193_p0, %p2187_p12 }
  0x40   : > { %2197 = shalt.err (!%p2194_p1)
}
  0x41   : > { %s2310_s6 = smov 256   ;;  %s2311_s7 = smov 16  }
  0x42   : > { %1827 = dma.hbm_to_vmem [thread:$0]  (!%p3409_p8), %s2419_s18, 8192, %s2421_s27, %s2423_s24, %s2310_s6, %s2310_s6, %s2311_s7  }
  0x43   : > { %p3410_p9 = scmp.ne.s32.totalorder %s3406_s20, 0 }
  0x45   : > { %138 = sbr.rel (%p3410_p9) target bundleno = 1608 (0x648), region = 28 }
  0x4c   : > { %s140_s8 = sand.u32 1, %s2278_s10   ;;  %p3411_p13 = scmp.ne.s32.totalorder %s3405_s19, 0 }
  0x4d   : > { %s1601_s9 = sshll.u32 %s140_s8, 9  ;;  %s141_s15 = scalar_lea.sflag [#allocation5], %s140_s8 }
  0x4e   : > { %s2454_s16 = scalar_lea.vmem [#allocation4], %s1601_s9 }
  0x4f   : > { %2261 = dma.done.wait (%p3411_p13), %s141_s15, 8192  }
  0x50   : > { %2263 = vsyncadd (%p3411_p13), %s141_s15, 4294959104  ;;  %p3412_p2 = scmp.eq.s32.totalorder %s2350_s13, 0 }
  0x52   : > { %2265 = dma.done.wait (%p3412_p2), [#allocation8], 64   ;;  %p3413_p8 = pmov %p3412_p2 }
  0x53   : > { %p3414_p3 = scmp.ne.s32.totalorder %s2350_s13, 0 }
  0x54   : > { %2267 = vsyncadd (%p3413_p8), [#allocation8], 4294967232  ;;  %v233_v0 = vlaneseq (!%p3414_p3)  ;;  %v2312_v1 = vmov (!%p3414_p3), 0.0  }
  0x55   : > { %168 = sbr.rel (%p3414_p3) target bundleno = 118 (0x76), region = 40  ;;  %169 = vst [vmem:[#allocation2] sm:$0xff] (!%p3414_p3), %v2312_v1  ;;  %170 = vst [vmem:[#allocation2 + $0x8] sm:$0xff] (!%p3414_p3), %v2312_v1 }
  0x56   : > { %171 = vst [vmem:[#allocation2 + $0x10] sm:$0xff] (!%p3414_p3), %v2312_v1  ;;  %172 = vst [vmem:[#allocation2 + $0x18] sm:$0xff] (!%p3414_p3), %v2312_v1  ;;  %vm235_vm0 = vcmp.lt.s32.totalorder (!%p3414_p3), %v233_v0, 256 }
  0x57   : > { %173 = vst [vmem:[#allocation2 + $0x20] sm:$0xff] (!%p3414_p3), %v2312_v1  ;;  %174 = vst [vmem:[#allocation2 + $0x28] sm:$0xff] (!%p3414_p3), %v2312_v1 }
  0x58   : > { %175 = vst [vmem:[#allocation2 + $0x30] sm:$0xff] (!%p3414_p3), %v2312_v1  ;;  %176 = vst [vmem:[#allocation2 + $0x38] sm:$0xff] (!%p3414_p3), %v2312_v1 }
  0x59   : > { %177 = vst [vmem:[#allocation2 + $0x40] sm:$0xff] (!%p3414_p3), %v2312_v1  ;;  %178 = vst [vmem:[#allocation2 + $0x48] sm:$0xff] (!%p3414_p3), %v2312_v1 }
  0x5a   : > { %179 = vst [vmem:[#allocation2 + $0x50] sm:$0xff] (!%p3414_p3), %v2312_v1  ;;  %180 = vst [vmem:[#allocation2 + $0x58] sm:$0xff] (!%p3414_p3), %v2312_v1 }
  0x5b   : > { %181 = vst [vmem:[#allocation2 + $0x60] sm:$0xff] (!%p3414_p3), %v2312_v1  ;;  %182 = vst [vmem:[#allocation2 + $0x68] sm:$0xff] (!%p3414_p3), %v2312_v1 }
  0x5c   : > { %183 = vst [vmem:[#allocation2 + $0x70] sm:$0xff] %v2312_v1  ;;  %184 = vst [vmem:[#allocation2 + $0x78] sm:$0xff] %v2312_v1 }
  0x5d   : > { %185 = vst [vmem:[#allocation2 + $0x80] sm:$0xff] %v2312_v1  ;;  %186 = vst [vmem:[#allocation2 + $0x88] sm:$0xff] %v2312_v1 }
  0x5e   : > { %187 = vst [vmem:[#allocation2 + $0x90] sm:$0xff] %v2312_v1  ;;  %188 = vst [vmem:[#allocation2 + $0x98] sm:$0xff] %v2312_v1 }
  0x5f   : > { %189 = vst [vmem:[#allocation2 + $0xa0] sm:$0xff] %v2312_v1  ;;  %190 = vst [vmem:[#allocation2 + $0xa8] sm:$0xff] %v2312_v1 }
  0x60   : > { %191 = vst [vmem:[#allocation2 + $0xb0] sm:$0xff] %v2312_v1  ;;  %192 = vst [vmem:[#allocation2 + $0xb8] sm:$0xff] %v2312_v1 }
  0x61   : > { %193 = vst [vmem:[#allocation2 + $0xc0] sm:$0xff] %v2312_v1  ;;  %194 = vst [vmem:[#allocation2 + $0xc8] sm:$0xff] %v2312_v1 }
  0x62   : > { %195 = vst [vmem:[#allocation2 + $0xd0] sm:$0xff] %v2312_v1  ;;  %196 = vst [vmem:[#allocation2 + $0xd8] sm:$0xff] %v2312_v1 }
  0x63   : > { %197 = vst [vmem:[#allocation2 + $0xe0] sm:$0xff] %v2312_v1  ;;  %198 = vst [vmem:[#allocation2 + $0xe8] sm:$0xff] %v2312_v1 }
  0x64   : > { %199 = vst [vmem:[#allocation2 + $0xf0] sm:$0xff] %v2312_v1  ;;  %200 = vst [vmem:[#allocation2 + $0xf8] sm:$0xff] %v2312_v1 }
  0x65   : > { %201 = vst [vmem:[#allocation2 + $0x100] sm:$0xff] %v2312_v1  ;;  %202 = vst [vmem:[#allocation2 + $0x108] sm:$0xff] %v2312_v1 }
  0x66   : > { %203 = vst [vmem:[#allocation2 + $0x110] sm:$0xff] %v2312_v1  ;;  %204 = vst [vmem:[#allocation2 + $0x118] sm:$0xff] %v2312_v1 }
  0x67   : > { %205 = vst [vmem:[#allocation2 + $0x120] sm:$0xff] %v2312_v1  ;;  %206 = vst [vmem:[#allocation2 + $0x128] sm:$0xff] %v2312_v1 }
  0x68   : > { %207 = vst [vmem:[#allocation2 + $0x130] sm:$0xff] %v2312_v1  ;;  %208 = vst [vmem:[#allocation2 + $0x138] sm:$0xff] %v2312_v1 }
  0x69   : > { %209 = vst [vmem:[#allocation2 + $0x140] sm:$0xff] %v2312_v1  ;;  %210 = vst [vmem:[#allocation2 + $0x148] sm:$0xff] %v2312_v1 }
  0x6a   : > { %211 = vst [vmem:[#allocation2 + $0x150] sm:$0xff] %v2312_v1  ;;  %212 = vst [vmem:[#allocation2 + $0x158] sm:$0xff] %v2312_v1 }
  0x6b   : > { %213 = vst [vmem:[#allocation2 + $0x160] sm:$0xff] %v2312_v1  ;;  %214 = vst [vmem:[#allocation2 + $0x168] sm:$0xff] %v2312_v1 }
  0x6c   : > { %215 = vst [vmem:[#allocation2 + $0x170] sm:$0xff] %v2312_v1  ;;  %216 = vst [vmem:[#allocation2 + $0x178] sm:$0xff] %v2312_v1 }
  0x6d   : > { %217 = vst [vmem:[#allocation2 + $0x180] sm:$0xff] %v2312_v1  ;;  %218 = vst [vmem:[#allocation2 + $0x188] sm:$0xff] %v2312_v1 }
  0x6e   : > { %219 = vst [vmem:[#allocation2 + $0x190] sm:$0xff] %v2312_v1  ;;  %220 = vst [vmem:[#allocation2 + $0x198] sm:$0xff] %v2312_v1 }
  0x6f   : > { %221 = vst [vmem:[#allocation2 + $0x1a0] sm:$0xff] %v2312_v1  ;;  %222 = vst [vmem:[#allocation2 + $0x1a8] sm:$0xff] %v2312_v1 }
  0x70   : > { %223 = vst [vmem:[#allocation2 + $0x1b0] sm:$0xff] %v2312_v1  ;;  %224 = vst [vmem:[#allocation2 + $0x1b8] sm:$0xff] %v2312_v1 }
  0x71   : > { %225 = vst [vmem:[#allocation2 + $0x1c0] sm:$0xff] %v2312_v1  ;;  %226 = vst [vmem:[#allocation2 + $0x1c8] sm:$0xff] %v2312_v1 }
  0x72   : > { %227 = vst [vmem:[#allocation2 + $0x1d0] sm:$0xff] %v2312_v1  ;;  %228 = vst [vmem:[#allocation2 + $0x1d8] sm:$0xff] %v2312_v1 }
  0x73   : > { %229 = vst [vmem:[#allocation2 + $0x1e0] sm:$0xff] %v2312_v1  ;;  %230 = vst [vmem:[#allocation2 + $0x1e8] sm:$0xff] %v2312_v1 }
  0x74   : > { %231 = vst [vmem:[#allocation2 + $0x1f0] sm:$0xff] %v2312_v1  ;;  %232 = vst [vmem:[#allocation2 + $0x1f8] sm:$0xff] %v2312_v1 }
  0x75   : > { %237 = vst.msk [vmem:[#allocation3] sm:$0x3] %vm235_vm0, %v2312_v1  ;;  %238 = vst.msk [vmem:[#allocation9] sm:$0x3] %vm235_vm0, %v2312_v1 }
  0x76 PF: > { %v239_v2 = vld [vmem:[%s2454_s16] sm:$0xff]  ;;  %v2538_v4 = vld [vmem:[%s2454_s16 + $0x110] sm:$0xff]  ;;  %v240_v14 = vld [vmem:[%s2454_s16 + $0x8] sm:$0xff]  ;;  %s1604_s19 = sshll.u32 %s2350_s13, 8  ;;  %p1605_p6 = scmp.ne.s32.totalorder %s2350_s13, 1 }
  0x77   : > { %v2535_v3 = vld [vmem:[%s2454_s16 + $0x100] sm:$0xff]  ;;  %v241_v6 = vld [vmem:[%s2454_s16 + $0x10] sm:$0xff]  ;;  %v2556_v16 = vld [vmem:[%s2454_s16 + $0x108] sm:$0xff]  ;;  %s304_s20 = sshra.s32 %s1604_s19, 7 }
  0x78   : > { %v1912_v5 = vpack.i.bf16 %v239_v2, %v2535_v3  ;;  %v1914_v7 = vpack.i.bf16 %v241_v6, %v2538_v4  ;;  %v243_v8 = vld [vmem:[%s2454_s16 + $0x20] sm:$0xff]  ;;  %v245_v11 = vld [vmem:[%s2454_s16 + $0x30] sm:$0xff]  ;;  %v2559_v17 = vld [vmem:[%s2454_s16 + $0x118] sm:$0xff]  ;;  %v1614_v19 = vpack.c.bf16 %v241_v6, %v239_v2  ;;  %v2024_v21 = vpack.i.bf16 %v240_v14, %v2556_v16  ;;  %s306_s25 = scalar_lea.vmem [#allocation7], %s304_s20 }
  0x79   : > { %v2545_v9 = vld [vmem:[%s2454_s16 + $0x120] sm:$0xff]  ;;  %v2550_v12 = vld [vmem:[%s2454_s16 + $0x130] sm:$0xff]  ;;  %v242_v18 = vld [vmem:[%s2454_s16 + $0x18] sm:$0xff]  ;;  %v1618_v29 = vpack.c.bf16 %v245_v11, %v243_v8 }
  0x7a   : > { %1913 = vxpose.xlu0.b32.start [1/16] %v1912_v5, 128  ;;  %v1916_v10 = vpack.i.bf16 %v243_v8, %v2545_v9  ;;  %v247_v13 = vld [vmem:[%s2454_s16 + $0x40] sm:$0xff]  ;;  %v1918_v15 = vpack.i.bf16 %v245_v11, %v2550_v12  ;;  %v1612_v22 = vpack.c.bf16 %v242_v18, %v240_v14  ;;  %v244_v23 = vld [vmem:[%s2454_s16 + $0x28] sm:$0xff]  ;;  %v246_v24 = vld [vmem:[%s2454_s16 + $0x38] sm:$0xff]  ;;  %2025 = vxpose.xlu1.b32.start [1/16] %v2024_v21, 128 }
  0x7b   : > { %v2563_v20 = vld [vmem:[%s2454_s16 + $0x140] sm:$0xff]  ;;  %v1616_v25 = vpack.c.bf16 %v246_v24, %v244_v23  ;;  %v2569_v26 = vld [vmem:[%s2454_s16 + $0x48] sm:$0xff]  ;;  %v2572_v27 = vld [vmem:[%s2454_s16 + $0x58] sm:$0xff]  ;;  %v2026_v28 = vpack.i.bf16 %v242_v18, %v2559_v17 }
  0x7c   : > { %1613 = vmatprep.subr.bf16.mxu0 %v1612_v22  ;;  %v1920_v30 = vpack.i.bf16 %v247_v13, %v2563_v20  ;;  %v2577_v31 = vld [vmem:[%s2454_s16 + $0x128] sm:$0xff]  ;;  %v249_v32 = vld [vmem:[%s2454_s16 + $0x50] sm:$0xff]  ;;  %v1620_v34 = vpack.c.bf16 %v2572_v27, %v2569_v26  ;;  %1677 = vmatprep.subr.bf16.mxu1 %v1612_v22  ;;  %v2589_v36 = vld [vmem:[%s2454_s16 + $0x78] sm:$0xff] }
  0x7d   : > { %1615 = vmatpush1.bf16.msra.mxu0 %v1614_v19  ;;  %v2581_v33 = vld [vmem:[%s2454_s16 + $0x150] sm:$0xff]  ;;  %v2586_v35 = vld [vmem:[%s2454_s16 + $0x68] sm:$0xff]  ;;  %1679 = vmatpush1.bf16.msra.mxu1 %v1614_v19  ;;  %v2028_v37 = vpack.i.bf16 %v244_v23, %v2577_v31  ;;  %v1622_v39 = vpack.c.bf16 %v249_v32, %v247_v13  ;;  %v2594_v40 = vld [vmem:[%s2454_s16 + $0x138] sm:$0xff] }
  0x7e   : > { %1915 = vxpose.xlu0.b32.cont [2/16] %v1914_v7, 128  ;;  %1617 = vmatprep.subr.bf16.mxu0 %v1616_v25  ;;  %v1922_v38 = vpack.i.bf16 %v249_v32, %v2581_v33  ;;  %v251_v41 = vld [vmem:[%s2454_s16 + $0x60] sm:$0xff]  ;;  %v1624_v43 = vpack.c.bf16 %v2589_v36, %v2586_v35  ;;  %v2603_v44 = vld [vmem:[%s2454_s16 + $0x88] sm:$0xff]  ;;  %v2606_v45 = vld [vmem:[%s2454_s16 + $0x98] sm:$0xff]  ;;  %v2030_v47 = vpack.i.bf16 %v246_v24, %v2594_v40 }
  0x7f   : > { %2027 = vxpose.xlu1.b32.cont [2/16] %v2026_v28, 128  ;;  %1681 = vmatprep.subr.bf16.mxu1 %v1616_v25  ;;  %v2598_v42 = vld [vmem:[%s2454_s16 + $0x160] sm:$0xff]  ;;  %v253_v46 = vld [vmem:[%s2454_s16 + $0x70] sm:$0xff]  ;;  %v2612_v50 = vld [vmem:[%s2454_s16 + $0x148] sm:$0xff]  ;;  %v1628_v52 = vpack.c.bf16 %v2606_v45, %v2603_v44 }
  0x80   : > { %v1924_v48 = vpack.i.bf16 %v251_v41, %v2598_v42  ;;  %v1626_v49 = vpack.c.bf16 %v253_v46, %v251_v41  ;;  %v2615_v51 = vld [vmem:[%s2454_s16 + $0x170] sm:$0xff]  ;;  %v2620_v53 = vld [vmem:[%s2454_s16 + $0xa8] sm:$0xff]  ;;  %v2623_v54 = vld [vmem:[%s2454_s16 + $0xb8] sm:$0xff]  ;;  %v2032_v57 = vpack.i.bf16 %v2569_v26, %v2612_v50 }
  0x81   : > { %1619 = vmatpush1.bf16.msra.mxu0 %v1618_v29  ;;  %1683 = vmatpush1.bf16.msra.mxu1 %v1618_v29  ;;  %v255_v55 = vld [vmem:[%s2454_s16 + $0x80] sm:$0xff]  ;;  %v257_v56 = vld [vmem:[%s2454_s16 + $0x90] sm:$0xff]  ;;  %v1926_v58 = vpack.i.bf16 %v253_v46, %v2615_v51  ;;  %v2631_v60 = vld [vmem:[%s2454_s16 + $0x158] sm:$0xff]  ;;  %v1632_v62 = vpack.c.bf16 %v2623_v54, %v2620_v53 }
  0x82   : > { %1917 = vxpose.xlu0.b32.cont [3/16] %v1916_v10, 128  ;;  %1621 = vmatprep.subr.bf16.mxu0 %v1620_v34  ;;  %v1630_v59 = vpack.c.bf16 %v257_v56, %v255_v55  ;;  %v2634_v61 = vld [vmem:[%s2454_s16 + $0x180] sm:$0xff]  ;;  %v2639_v63 = vld [vmem:[%s2454_s16 + $0xc8] sm:$0xff]  ;;  %v2642_v0 = vld [vmem:[%s2454_s16 + $0xd8] sm:$0xff]  ;;  %v2034_v5 = vpack.i.bf16 %v2572_v27, %v2631_v60 }
  0x83   : > { %2029 = vxpose.xlu1.b32.cont [3/16] %v2028_v37, 128  ;;  %1685 = vmatprep.subr.bf16.mxu1 %v1620_v34  ;;  %v259_v1 = vld [vmem:[%s2454_s16 + $0xa0] sm:$0xff]  ;;  %v261_v2 = vld [vmem:[%s2454_s16 + $0xb0] sm:$0xff]  ;;  %v1928_v6 = vpack.i.bf16 %v255_v55, %v2634_v61  ;;  %v2650_v8 = vld [vmem:[%s2454_s16 + $0x168] sm:$0xff]  ;;  %v1636_v11 = vpack.c.bf16 %v2642_v0, %v2639_v63  ;;  %v1646_v37 = vpack.c.bf16 %v2538_v4, %v2535_v3 }
  0x84   : > { %v1634_v7 = vpack.c.bf16 %v261_v2, %v259_v1  ;;  %v2653_v10 = vld [vmem:[%s2454_s16 + $0x190] sm:$0xff]  ;;  %v2658_v13 = vld [vmem:[%s2454_s16 + $0xe8] sm:$0xff]  ;;  %v2661_v14 = vld [vmem:[%s2454_s16 + $0xf8] sm:$0xff]  ;;  %v2036_v19 = vpack.i.bf16 %v2586_v35, %v2650_v8  ;;  %v1644_v35 = vpack.c.bf16 %v2559_v17, %v2556_v16  ;;  %v1648_v16 = vpack.c.bf16 %v2594_v40, %v2577_v31 }
  0x85   : > { %1623 = vmatpush1.bf16.msra.mxu0 %v1622_v39  ;;  %1687 = vmatpush1.bf16.msra.mxu1 %v1622_v39  ;;  %v2665_v18 = vld [vmem:[%s2454_s16 + $0xd0] sm:$0xff]  ;;  %v1930_v21 = vpack.i.bf16 %v257_v56, %v2653_v10  ;;  %v286_v23 = vld [vmem:[%s2454_s16 + $0x178] sm:$0xff]  ;;  %v2673_v24 = vld [vmem:[%s2454_s16 + $0x1a0] sm:$0xff]  ;;  %v1640_v25 = vpack.c.bf16 %v2661_v14, %v2658_v13  ;;  %v1650_v3 = vpack.c.bf16 %v2550_v12, %v2545_v9 }
  0x86   : > { %1919 = vxpose.xlu0.b32.cont [4/16] %v1918_v15, 128  ;;  %1625 = vmatprep.subr.bf16.mxu0 %v1624_v43  ;;  %v263_v15 = vld [vmem:[%s2454_s16 + $0xc0] sm:$0xff]  ;;  %v2681_v27 = vld [vmem:[%s2454_s16 + $0xf0] sm:$0xff]  ;;  %v2038_v28 = vpack.i.bf16 %v2589_v36, %v286_v23  ;;  %v1932_v29 = vpack.i.bf16 %v259_v1, %v2673_v24  ;;  %v288_v32 = vld [vmem:[%s2454_s16 + $0x188] sm:$0xff]  ;;  %v1652_v31 = vpack.c.bf16 %v2631_v60, %v2612_v50 }
  0x87   : > { %2031 = vxpose.xlu1.b32.cont [4/16] %v2030_v47, 128  ;;  %1689 = vmatprep.subr.bf16.mxu1 %v1624_v43  ;;  %v1638_v22 = vpack.c.bf16 %v2665_v18, %v263_v15  ;;  %v2678_v26 = vld [vmem:[%s2454_s16 + $0xe0] sm:$0xff]  ;;  %v2689_v34 = vld [vmem:[%s2454_s16 + $0x1b0] sm:$0xff]  ;;  %v2040_v36 = vpack.i.bf16 %v2603_v44, %v288_v32  ;;  %v290_v39 = vld [vmem:[%s2454_s16 + $0x198] sm:$0xff]  ;;  %v1654_v9 = vpack.c.bf16 %v2581_v33, %v2563_v20 }
  0x88   : > { %v2699_v41 = vld [vmem:[%s2454_s16 + $0x1c0] sm:$0xff]  ;;  %v2042_v17 = vpack.i.bf16 %v2606_v45, %v290_v39  ;;  %v292_v43 = vld [vmem:[%s2454_s16 + $0x1a8] sm:$0xff]  ;;  %v297_v44 = vld [vmem:[%s2454_s16 + $0x1d0] sm:$0xff]  ;;  %v1656_v47 = vpack.c.bf16 %v286_v23, %v2650_v8 }
  0x89   : > { %1627 = vmatpush1.bf16.msra.mxu0 %v1626_v49  ;;  %1691 = vmatpush1.bf16.msra.mxu1 %v1626_v49  ;;  %v1936_v4 = vpack.i.bf16 %v263_v15, %v2699_v41  ;;  %v2044_v40 = vpack.i.bf16 %v2620_v53, %v292_v43  ;;  %v1938_v12 = vpack.i.bf16 %v2665_v18, %v297_v44  ;;  %v294_v45 = vld [vmem:[%s2454_s16 + $0x1b8] sm:$0xff]  ;;  %v299_v46 = vld [vmem:[%s2454_s16 + $0x1e0] sm:$0xff]  ;;  %v296_v33 = vld [vmem:[%s2454_s16 + $0x1c8] sm:$0xff] }
  0x8a   : > { %1921 = vxpose.xlu0.b32.cont [5/16] %v1920_v30, 128  ;;  %1629 = vmatprep.subr.bf16.mxu0 %v1628_v52  ;;  %v1642_v30 = vpack.c.bf16 %v2681_v27, %v2678_v26  ;;  %v1658_v49 = vpack.c.bf16 %v2615_v51, %v2598_v42  ;;  %v1940_v20 = vpack.i.bf16 %v2678_v26, %v299_v46  ;;  %v301_v50 = vld [vmem:[%s2454_s16 + $0x1f0] sm:$0xff]  ;;  %v298_v51 = vld [vmem:[%s2454_s16 + $0x1d8] sm:$0xff] }
  0x8b   : > { %2033 = vxpose.xlu1.b32.cont [5/16] %v2032_v57, 128  ;;  %1693 = vmatprep.subr.bf16.mxu1 %v1628_v52  ;;  %v1660_v52 = vpack.c.bf16 %v290_v39, %v288_v32  ;;  %v2048_v53 = vpack.i.bf16 %v2639_v63, %v296_v33  ;;  %v1942_v42 = vpack.i.bf16 %v2681_v27, %v301_v50 }
  0x8c   : > { %v1664_v55 = vpack.c.bf16 %v294_v45, %v292_v43  ;;  %v2050_v56 = vpack.i.bf16 %v2642_v0, %v298_v51  ;;  %v1666_v57 = vpack.c.bf16 %v2689_v34, %v2673_v24  ;;  %v1674_v1 = vpack.c.bf16 %v301_v50, %v299_v46 }
  0x8d   : > { %1631 = vmatpush1.bf16.msra.mxu0 %v1630_v59  ;;  %1695 = vmatpush1.bf16.msra.mxu1 %v1630_v59  ;;  %v1668_v59 = vpack.c.bf16 %v298_v51, %v296_v33 }
  0x8e   : > { %1923 = vxpose.xlu0.b32.cont [6/16] %v1922_v38, 128  ;;  %1633 = vmatprep.subr.bf16.mxu0 %v1632_v62  ;;  %v1934_v38 = vpack.i.bf16 %v261_v2, %v2689_v34  ;;  %v887_v2 = vlaneseq }
  0x8f   : > { %2035 = vxpose.xlu1.b32.cont [6/16] %v2034_v5, 128  ;;  %1697 = vmatprep.subr.bf16.mxu1 %v1632_v62  ;;  %v302_v62 = vld [vmem:[%s2454_s16 + $0x1f8] sm:$0xff] }
  0x90   : > { %v2054_v0 = vpack.i.bf16 %v2661_v14, %v302_v62  ;;  %v2739_v5 = vshrl.u32 %v887_v2, 7  ;;  %vm2803_vm1 = vcmp.lt.s32.totalorder %v887_v2, 256 }
  0x91   : > { %1635 = vmatpush1.bf16.msra.mxu0 %v1634_v7  ;;  %1699 = vmatpush1.bf16.msra.mxu1 %v1634_v7  ;;  %v307_v7 = vld [vmem:[%s306_s25] sm:$0x3] }
  0x92   : > { %1925 = vxpose.xlu0.b32.cont [7/16] %v1924_v48, 128  ;;  %1637 = vmatprep.subr.bf16.mxu0 %v1636_v11  ;;  %v2046_v48 = vpack.i.bf16 %v2623_v54, %v294_v45  ;;  %v1662_v54 = vpack.c.bf16 %v2653_v10, %v2634_v61  ;;  %v1670_v61 = vpack.c.bf16 %v297_v44, %v2699_v41  ;;  %v2745_v8 = vsub.s32 0, %v2739_v5 }
  0x93   : > { %2037 = vxpose.xlu1.b32.cont [7/16] %v2036_v19, 128  ;;  %1701 = vmatprep.subr.bf16.mxu1 %v1636_v11 }
  0x94   : > { %v890_v11 = vrot.slane %v307_v7, %v2745_v8 }
  0x95   : > { %1639 = vmatpush1.bf16.msra.mxu0 %v1638_v22  ;;  %1703 = vmatpush1.bf16.msra.mxu1 %v1638_v22 }
  0x96   : > { %1927 = vxpose.xlu0.b32.cont [8/16] %v1926_v58, 128  ;;  %1641 = vmatprep.subr.bf16.mxu0 %v1640_v25  ;;  %v300_v58 = vld [vmem:[%s2454_s16 + $0x1e8] sm:$0xff] }
  0x97   : > { %2039 = vxpose.xlu1.b32.cont [8/16] %v2038_v28, 128  ;;  %1705 = vmatprep.subr.bf16.mxu1 %v1640_v25  ;;  %v2052_v60 = vpack.i.bf16 %v2658_v13, %v300_v58  ;;  %v1672_v63 = vpack.c.bf16 %v302_v62, %v300_v58 }
  0x99   : > { %1643 = vmatpush1.bf16.msra.mxu0 %v1642_v30  ;;  %1707 = vmatpush1.bf16.msra.mxu1 %v1642_v30 }
  0x9a   : > { %1929 = vxpose.xlu0.b32.cont [9/16] %v1928_v6, 128  ;;  %1645 = vmatprep.subr.bf16.mxu0 %v1644_v35  ;;  %v2742_v6 = vsub.s32 1, %v2739_v5 }
  0x9b   : > { %2041 = vxpose.xlu1.b32.cont [9/16] %v2040_v36, 128  ;;  %1709 = vmatprep.subr.bf16.mxu1 %v1644_v35 }
  0x9c   : > { %v894_v10 = vrot.slane %v307_v7, %v2742_v6 }
  0x9d   : > { %1647 = vmatpush1.bf16.msra.mxu0 %v1646_v37  ;;  %1711 = vmatpush1.bf16.msra.mxu1 %v1646_v37 }
  0x9e   : > { %1931 = vxpose.xlu0.b32.cont [10/16] %v1930_v21, 128  ;;  %1649 = vmatprep.subr.bf16.mxu0 %v1648_v16 }
  0x9f   : > { %2043 = vxpose.xlu1.b32.cont [10/16] %v2042_v17, 128  ;;  %1713 = vmatprep.subr.bf16.mxu1 %v1648_v16 }
  0xa0   : > { %961 = vmatprep.mubr.f32.mxu1 %v894_v10 }
  0xa1   : > { %1651 = vmatpush1.bf16.msra.mxu0 %v1650_v3  ;;  %1715 = vmatpush1.bf16.msra.mxu1 %v1650_v3 }
  0xa2   : > { %1933 = vxpose.xlu0.b32.cont [11/16] %v1932_v29, 128  ;;  %1653 = vmatprep.subr.bf16.mxu0 %v1652_v31 }
  0xa3   : > { %2045 = vxpose.xlu1.b32.cont [11/16] %v2044_v40, 128  ;;  %1717 = vmatprep.subr.bf16.mxu1 %v1652_v31 }
  0xa5   : > { %1655 = vmatpush1.bf16.msra.mxu0 %v1654_v9  ;;  %1719 = vmatpush1.bf16.msra.mxu1 %v1654_v9 }
  0xa6   : > { %1935 = vxpose.xlu0.b32.cont [12/16] %v1934_v38, 128  ;;  %1657 = vmatprep.subr.bf16.mxu0 %v1656_v47 }
  0xa7   : > { %2047 = vxpose.xlu1.b32.cont [12/16] %v2046_v48, 128  ;;  %1721 = vmatprep.subr.bf16.mxu1 %v1656_v47 }
  0xa9   : > { %1659 = vmatpush1.bf16.msra.mxu0 %v1658_v49  ;;  %1723 = vmatpush1.bf16.msra.mxu1 %v1658_v49 }
  0xaa   : > { %1937 = vxpose.xlu0.b32.cont [13/16] %v1936_v4, 128  ;;  %1661 = vmatprep.subr.bf16.mxu0 %v1660_v52 }
  0xab   : > { %2049 = vxpose.xlu1.b32.cont [13/16] %v2048_v53, 128  ;;  %1725 = vmatprep.subr.bf16.mxu1 %v1660_v52 }
  0xad   : > { %1663 = vmatpush1.bf16.msra.mxu0 %v1662_v54  ;;  %1727 = vmatpush1.bf16.msra.mxu1 %v1662_v54 }
  0xae   : > { %1939 = vxpose.xlu0.b32.cont [14/16] %v1938_v12, 128  ;;  %1665 = vmatprep.subr.bf16.mxu0 %v1664_v55 }
  0xaf   : > { %2051 = vxpose.xlu1.b32.cont [14/16] %v2050_v56, 128  ;;  %1729 = vmatprep.subr.bf16.mxu1 %v1664_v55 }
  0xb1   : > { %1667 = vmatpush1.bf16.msra.mxu0 %v1666_v57  ;;  %1731 = vmatpush1.bf16.msra.mxu1 %v1666_v57 }
  0xb2   : > { %1941 = vxpose.xlu0.b32.cont [15/16] %v1940_v20, 128  ;;  %1669 = vmatprep.subr.bf16.mxu0 %v1668_v59 }
  0xb3   : > { %2053 = vxpose.xlu1.b32.cont [15/16] %v2052_v60, 128  ;;  %1733 = vmatprep.subr.bf16.mxu1 %v1668_v59 }
  0xb5   : > { %1671 = vmatpush1.bf16.msra.mxu0 %v1670_v61  ;;  %1735 = vmatpush1.bf16.msra.mxu1 %v1670_v61 }
  0xb6   : > { %1943 = vxpose.xlu0.b32.end [16/16] %v1942_v42, 128  ;;  %1673 = vmatprep.subr.bf16.mxu0 %v1672_v63 }
  0xb7   : > { %2055 = vxpose.xlu1.b32.end [16/16] %v2054_v0, 128  ;;  %1737 = vmatprep.subr.bf16.mxu1 %v1672_v63 }
  0xb9   : > { %1675 = vmatpush1.bf16.msra.mxu0 %v1674_v1  ;;  %1739 = vmatpush1.bf16.msra.mxu1 %v1674_v1 }
  0xbc   : > { %962 = vmatmul.mubr.f32.vlgmr.msra.gmra.mrb[0].mxu1 %v890_v11 }
  0xfa   : > { %v1944_v13 = vpop.trf.xlu0 }
  0xfb   : > { %v1945_v14 = vunpack.i.l.bf16 %v1944_v13  ;;  %v1948_v15 = vunpack.i.h.bf16 %v1944_v13  ;;  %v2749_v25 = vpop.trf.xlu1 }
  0xfc   : > { %v2057_v11 = vunpack.i.l.bf16 %v2749_v25 }
  0xfd   : > { %564 = vmatprep.mubr.f32.mxu0 %v1945_v14 }
  0xfe   : > { %v1949_v18 = vpop.trf.xlu0  ;;  %565 = vmatmul.mubr.f32.vlgmr.msra.gmra.mrb[0].mxu0 %v1948_v15 }
  0xff   : > { %v1950_v19 = vunpack.i.l.bf16 %v1949_v18  ;;  %v1953_v21 = vunpack.i.h.bf16 %v1949_v18  ;;  %v2751_v29 = vpop.trf.xlu1  ;;  %v2060_v18 = vunpack.i.h.bf16 %v2749_v25 }
 0x101   : > { %570 = vmatprep.mubr.f32.mxu0 %v1950_v19  ;;  %v2062_v19 = vunpack.i.l.bf16 %v2751_v29 }
 0x102   : > { %v1954_v22 = vpop.trf.xlu0  ;;  %571 = vmatmul.mubr.f32.gmra.mrb[2].mxu0 %v1953_v21 }
 0x103   : > { %v1955_v23 = vunpack.i.l.bf16 %v1954_v22  ;;  %v1958_v24 = vunpack.i.h.bf16 %v1954_v22  ;;  %v2753_v35 = vpop.trf.xlu1  ;;  %v2065_v22 = vunpack.i.h.bf16 %v2751_v29 }
 0x105   : > { %576 = vmatprep.mubr.f32.mxu0 %v1955_v23  ;;  %v2067_v23 = vunpack.i.l.bf16 %v2753_v35 }
 0x106   : > { %v1959_v26 = vpop.trf.xlu0  ;;  %577 = vmatmul.mubr.f32.gmra.mrb[4].mxu0 %v1958_v24 }
 0x107   : > { %v1960_v27 = vunpack.i.l.bf16 %v1959_v26  ;;  %v1963_v28 = vunpack.i.h.bf16 %v1959_v26  ;;  %v2755_v39 = vpop.trf.xlu1  ;;  %v2070_v26 = vunpack.i.h.bf16 %v2753_v35 }
 0x108   : > { %v2075_v25 = vunpack.i.h.bf16 %v2755_v39 }
 0x109   : > { %582 = vmatprep.mubr.f32.mxu0 %v1960_v27  ;;  %v2072_v27 = vunpack.i.l.bf16 %v2755_v39 }
 0x10a   : > { %v1964_v30 = vpop.trf.xlu0  ;;  %583 = vmatmul.mubr.f32.gmra.mrb[6].mxu0 %v1963_v28 }
 0x10b   : > { %v1965_v32 = vunpack.i.l.bf16 %v1964_v30  ;;  %v1968_v34 = vunpack.i.h.bf16 %v1964_v30  ;;  %v2757_v3 = vpop.trf.xlu1 }
 0x10c   : > { %v2077_v28 = vunpack.i.l.bf16 %v2757_v3  ;;  %v2080_v30 = vunpack.i.h.bf16 %v2757_v3 }
 0x10d   : > { %588 = vmatprep.mubr.f32.mxu0 %v1965_v32 }
 0x10e   : > { %v1969_v36 = vpop.trf.xlu0  ;;  %589 = vmatmul.mubr.f32.gmra.mrb[8].mxu0 %v1968_v34 }
 0x10f   : > { %v1970_v37 = vunpack.i.l.bf16 %v1969_v36  ;;  %v1973_v38 = vunpack.i.h.bf16 %v1969_v36  ;;  %v2759_v31 = vpop.trf.xlu1 }
 0x110   : > { %v2082_v29 = vunpack.i.l.bf16 %v2759_v31  ;;  %v2085_v32 = vunpack.i.h.bf16 %v2759_v31 }
 0x111   : > { %594 = vmatprep.mubr.f32.mxu0 %v1970_v37 }
 0x112   : > { %v1974_v41 = vpop.trf.xlu0  ;;  %595 = vmatmul.mubr.f32.gmra.mrb[10].mxu0 %v1973_v38 }
 0x113   : > { %v1975_v16 = vunpack.i.l.bf16 %v1974_v41  ;;  %v1978_v17 = vunpack.i.h.bf16 %v1974_v41  ;;  %v2761_v45 = vpop.trf.xlu1 }
 0x114   : > { %v2087_v34 = vunpack.i.l.bf16 %v2761_v45  ;;  %v2090_v35 = vunpack.i.h.bf16 %v2761_v45 }
 0x115   : > { %600 = vmatprep.mubr.f32.mxu0 %v1975_v16 }
 0x116   : > { %v1979_v4 = vpop.trf.xlu0  ;;  %601 = vmatmul.mubr.f32.gmra.mrb[12].mxu0 %v1978_v17 }
 0x117   : > { %v1980_v43 = vunpack.i.l.bf16 %v1979_v4  ;;  %v1983_v44 = vunpack.i.h.bf16 %v1979_v4  ;;  %v2763_v49 = vpop.trf.xlu1 }
 0x118   : > { %v2092_v36 = vunpack.i.l.bf16 %v2763_v49  ;;  %v2095_v37 = vunpack.i.h.bf16 %v2763_v49 }
 0x119   : > { %606 = vmatprep.mubr.f32.mxu0 %v1980_v43 }
 0x11a   : > { %v1984_v40 = vpop.trf.xlu0  ;;  %607 = vmatmul.mubr.f32.gmra.mrb[14].mxu0 %v1983_v44 }
 0x11b   : > { %v1985_v9 = vunpack.i.l.bf16 %v1984_v40  ;;  %v1988_v12 = vunpack.i.h.bf16 %v1984_v40  ;;  %v2765_v52 = vpop.trf.xlu1 }
 0x11c   : > { %v2097_v38 = vunpack.i.l.bf16 %v2765_v52  ;;  %v2100_v39 = vunpack.i.h.bf16 %v2765_v52 }
 0x11d   : > { %612 = vmatprep.mubr.f32.mxu0 %v1985_v9 }
 0x11e   : > { %v1989_v46 = vpop.trf.xlu0  ;;  %613 = vmatmul.mubr.f32.gmra.mrb[16].mxu0 %v1988_v12 }
 0x11f   : > { %v1990_v47 = vunpack.i.l.bf16 %v1989_v46  ;;  %v1993_v48 = vunpack.i.h.bf16 %v1989_v46  ;;  %v2767_v51 = vpop.trf.xlu1 }
 0x120   : > { %v2102_v41 = vunpack.i.l.bf16 %v2767_v51  ;;  %v2105_v16 = vunpack.i.h.bf16 %v2767_v51 }
 0x121   : > { %618 = vmatprep.mubr.f32.mxu0 %v1990_v47 }
 0x122   : > { %v1994_v20 = vpop.trf.xlu0  ;;  %619 = vmatmul.mubr.f32.gmra.mrb[18].mxu0 %v1993_v48  ;;  %v2313_v48 = vmov 1966171168  }
 0x123   : > { %v1995_v33 = vunpack.i.l.bf16 %v1994_v20  ;;  %v1998_v50 = vunpack.i.h.bf16 %v1994_v20  ;;  %v2769_v58 = vpop.trf.xlu1  ;;  %v972_v49 = vunpack.c.l.s4 %v2313_v48  ;;  %v324_v48 = vld [vmem:[#allocation2 + $0x80] sm:$0xff] }
 0x124   : > { %v2107_v17 = vunpack.i.l.bf16 %v2769_v58  ;;  %v2110_v3 = vunpack.i.h.bf16 %v2769_v58  ;;  %v309_v58 = vld [vmem:[#allocation2 + $0x8] sm:$0xff] }
 0x125   : > { %624 = vmatprep.mubr.f32.mxu0 %v1995_v33  ;;  %v973_v33 = vunpack.c.0.s8 %v972_v49  ;;  %v325_v49 = vld [vmem:[#allocation2 + $0x88] sm:$0xff] }
 0x126   : > { %v1999_v53 = vpop.trf.xlu0  ;;  %625 = vmatmul.mubr.f32.gmra.mrb[20].mxu0 %v1998_v50 }
 0x127   : > { %v2000_v54 = vunpack.i.l.bf16 %v1999_v53  ;;  %v2003_v42 = vunpack.i.h.bf16 %v1999_v53  ;;  %v2771_v62 = vpop.trf.xlu1  ;;  %v2798_v53 = vsub.s32 %v973_v33, %v2739_v5 }
 0x128   : > { %v2112_v4 = vunpack.i.l.bf16 %v2771_v62  ;;  %v2115_v43 = vunpack.i.h.bf16 %v2771_v62 }
 0x129   : > { %630 = vmatprep.mubr.f32.mxu0 %v2000_v54  ;;  %3415 = vst [vmem:[#allocation13_spill] sm:$0xff] %v2798_v53 }
 0x12a   : > { %v2004_v55 = vpop.trf.xlu0  ;;  %631 = vmatmul.mubr.f32.gmra.mrb[22].mxu0 %v2003_v42  ;;  %v885_v42 = vld [vmem:[#allocation3] sm:$0x3] }
 0x12b   : > { %v2005_v56 = vunpack.i.l.bf16 %v2004_v55  ;;  %v2008_v57 = vunpack.i.h.bf16 %v2004_v55  ;;  %v2116_v7 = vpop.trf.xlu1  ;;  %v3416_v55 = vmov 0 }
 0x12c   : > { %v2117_v44 = vunpack.i.l.bf16 %v2116_v7  ;;  %v2120_v31 = vunpack.i.h.bf16 %v2116_v7  ;;  %v3417_v55 = vsel %vm2803_vm1, 4294967295, %v3416_v55 }
 0x12d   : > { %636 = vmatprep.mubr.f32.mxu0 %v2005_v56  ;;  %3418 = vst [vmem:[#allocation14_spill] sm:$0xff] %v3417_v55 }
 0x12e   : > { %v2009_v59 = vpop.trf.xlu0  ;;  %637 = vmatmul.mubr.f32.gmra.mrb[24].mxu0 %v2008_v57  ;;  %v308_v57 = vld [vmem:[#allocation2] sm:$0xff] }
 0x12f   : > { %v2010_v60 = vunpack.i.l.bf16 %v2009_v59  ;;  %v2013_v61 = vunpack.i.h.bf16 %v2009_v59  ;;  %v2121_v15 = vpop.trf.xlu1 }
 0x130   : > { %v2122_v40 = vunpack.i.l.bf16 %v2121_v15  ;;  %v2125_v9 = vunpack.i.h.bf16 %v2121_v15 }
 0x131   : > { %642 = vmatprep.mubr.f32.mxu0 %v2010_v60 }
 0x132   : > { %v2014_v63 = vpop.trf.xlu0  ;;  %643 = vmatmul.mubr.f32.gmra.mrb[26].mxu0 %v2013_v61 }
 0x133   : > { %v2015_v0 = vunpack.i.l.bf16 %v2014_v63  ;;  %v2018_v1 = vunpack.i.h.bf16 %v2014_v63  ;;  %v2126_v21 = vpop.trf.xlu1  ;;  %v310_v63 = vld [vmem:[#allocation2 + $0x10] sm:$0xff] }
 0x134   : > { %v2127_v12 = vunpack.i.l.bf16 %v2126_v21  ;;  %v2130_v45 = vunpack.i.h.bf16 %v2126_v21 }
 0x135   : > { %648 = vmatprep.mubr.f32.mxu0 %v2015_v0  ;;  %v311_v0 = vld [vmem:[#allocation2 + $0x18] sm:$0xff] }
 0x136   : > { %v2019_v10 = vpop.trf.xlu0  ;;  %649 = vmatmul.mubr.f32.gmra.mrb[28].mxu0 %v2018_v1 }
 0x137   : > { %v2023_v13 = vunpack.i.h.bf16 %v2019_v10  ;;  %v2020_v14 = vunpack.i.l.bf16 %v2019_v10  ;;  %v2131_v24 = vpop.trf.xlu1 }
 0x138   : > { %v2132_v46 = vunpack.i.l.bf16 %v2131_v24  ;;  %v2135_v47 = vunpack.i.h.bf16 %v2131_v24 }
 0x139   : > { %654 = vmatprep.mubr.f32.mxu0 %v2020_v14  ;;  %v313_v14 = vld [vmem:[#allocation2 + $0x28] sm:$0xff] }
 0x13a   : > { %655 = vmatmul.mubr.f32.gmra.mrb[30].mxu0 %v2023_v13  ;;  %v312_v13 = vld [vmem:[#allocation2 + $0x20] sm:$0xff] }
 0x13b   : > { %660 = vmatprep.mubr.f32.mxu0 %v2057_v11 }
 0x13e   : > { %661 = vmatmul.mubr.f32.gmra.mrb[32].mxu0 %v2060_v18 }
 0x13f   : > { %666 = vmatprep.mubr.f32.mxu0 %v2062_v19 }
 0x142   : > { %667 = vmatmul.mubr.f32.gmra.mrb[34].mxu0 %v2065_v22  ;;  %v314_v22 = vld [vmem:[#allocation2 + $0x30] sm:$0xff] }
 0x143   : > { %672 = vmatprep.mubr.f32.mxu0 %v2067_v23  ;;  %v315_v23 = vld [vmem:[#allocation2 + $0x38] sm:$0xff] }
 0x146   : > { %673 = vmatmul.mubr.f32.gmra.mrb[36].mxu0 %v2070_v26 }
 0x147   : > { %678 = vmatprep.mubr.f32.mxu0 %v2072_v27 }
 0x14a   : > { %679 = vmatmul.mubr.f32.gmra.mrb[38].mxu0 %v2075_v25 }
 0x14b   : > { %684 = vmatprep.mubr.f32.mxu0 %v2077_v28  ;;  %v316_v28 = vld [vmem:[#allocation2 + $0x40] sm:$0xff] }
 0x14e   : > { %685 = vmatmul.mubr.f32.gmra.mrb[40].mxu0 %v2080_v30  ;;  %v317_v30 = vld [vmem:[#allocation2 + $0x48] sm:$0xff] }
 0x14f   : > { %690 = vmatprep.mubr.f32.mxu0 %v2082_v29 }
 0x152   : > { %691 = vmatmul.mubr.f32.gmra.mrb[42].mxu0 %v2085_v32 }
 0x153   : > { %696 = vmatprep.mubr.f32.mxu0 %v2087_v34 }
 0x156   : > { %697 = vmatmul.mubr.f32.gmra.mrb[44].mxu0 %v2090_v35 }
 0x157   : > { %702 = vmatprep.mubr.f32.mxu0 %v2092_v36  ;;  %v318_v36 = vld [vmem:[#allocation2 + $0x50] sm:$0xff] }
 0x15a   : > { %703 = vmatmul.mubr.f32.gmra.mrb[46].mxu0 %v2095_v37  ;;  %v319_v37 = vld [vmem:[#allocation2 + $0x58] sm:$0xff] }
 0x15b   : > { %708 = vmatprep.mubr.f32.mxu0 %v2097_v38 }
 0x15e   : > { %709 = vmatmul.mubr.f32.gmra.mrb[48].mxu0 %v2100_v39 }
 0x15f   : > { %714 = vmatprep.mubr.f32.mxu0 %v2102_v41 }
 0x162   : > { %715 = vmatmul.mubr.f32.gmra.mrb[50].mxu0 %v2105_v16 }
 0x163   : > { %720 = vmatprep.mubr.f32.mxu0 %v2107_v17  ;;  %v320_v17 = vld [vmem:[#allocation2 + $0x60] sm:$0xff] }
 0x166   : > { %721 = vmatmul.mubr.f32.gmra.mrb[52].mxu0 %v2110_v3  ;;  %v321_v3 = vld [vmem:[#allocation2 + $0x68] sm:$0xff] }
 0x167   : > { %726 = vmatprep.mubr.f32.mxu0 %v2112_v4 }
 0x16a   : > { %727 = vmatmul.mubr.f32.gmra.mrb[54].mxu0 %v2115_v43 }
 0x16b   : > { %732 = vmatprep.mubr.f32.mxu0 %v2117_v44 }
 0x16e   : > { %733 = vmatmul.mubr.f32.gmra.mrb[56].mxu0 %v2120_v31 }
 0x16f   : > { %738 = vmatprep.mubr.f32.mxu0 %v2122_v40  ;;  %v322_v40 = vld [vmem:[#allocation2 + $0x70] sm:$0xff] }
 0x172   : > { %739 = vmatmul.mubr.f32.gmra.mrb[58].mxu0 %v2125_v9  ;;  %v323_v9 = vld [vmem:[#allocation2 + $0x78] sm:$0xff] }
 0x173   : > { %744 = vmatprep.mubr.f32.mxu0 %v2127_v12 }
 0x176   : > { %745 = vmatmul.mubr.f32.gmra.mrb[60].mxu0 %v2130_v45 }
 0x177   : > { %750 = vmatprep.mubr.f32.mxu0 %v2132_v46 }
 0x17a   : > { %751 = vmatmul.mubr.f32.gmra.mrb[62].mxu0 %v2135_v47 }
 0x18f   : > { %v963_v20 = vpop.f32.mrb[0].mxu1 }
 0x190   : > { %v965_v50 = vpop.f32.mrb[1].mxu1 }
 0x191   : > { %v970_v52 = vcombine.low %v963_v20, %v965_v50 }
 0x193   : > { %v977_v54 = vrot.slane %v970_v52, %v2798_v53 }
 0x195   : > { %v984_v51 = vrot.slane %v977_v54, %v2798_v53  ;;  %v326_v54 = vld [vmem:[#allocation2 + $0x90] sm:$0xff] }
 0x197   : > { %v986_v56 = vadd.f32 %v984_v51, %v885_v42  ;;  %v327_v42 = vld [vmem:[#allocation2 + $0x98] sm:$0xff] }
 0x199   : > { %991 = vst.msk [vmem:[#allocation3] sm:$0x3] %vm2803_vm1, %v986_v56 }
 0x1d1   : > { %v566_v59 = vpop.f32.mrb[0].mxu0 }
 0x1d2   : > { %v757_v60 = vadd.f32 %v566_v59, %v308_v57  ;;  %v568_v61 = vpop.f32.mrb[1].mxu0  ;;  %v328_v59 = vld [vmem:[#allocation2 + $0xa0] sm:$0xff] }
 0x1d3   : > { %v758_v62 = vadd.f32 %v568_v61, %v309_v58 }
 0x1d4   : > { %821 = vst [vmem:[#allocation2] sm:$0xff] %v757_v60  ;;  %v329_v60 = vld [vmem:[#allocation2 + $0xa8] sm:$0xff] }
 0x1d5   : > { %822 = vst [vmem:[#allocation2 + $0x8] sm:$0xff] %v758_v62  ;;  %v572_v1 = vpop.f32.mrb[2].mxu0 }
 0x1d6   : > { %v759_v7 = vadd.f32 %v572_v1, %v310_v63  ;;  %v574_v10 = vpop.f32.mrb[3].mxu0  ;;  %v330_v1 = vld [vmem:[#allocation2 + $0xb0] sm:$0xff] }
 0x1d7   : > { %v760_v11 = vadd.f32 %v574_v10, %v311_v0 }
 0x1d8   : > { %823 = vst [vmem:[#allocation2 + $0x10] sm:$0xff] %v759_v7  ;;  %v331_v7 = vld [vmem:[#allocation2 + $0xb8] sm:$0xff] }
 0x1d9   : > { %824 = vst [vmem:[#allocation2 + $0x18] sm:$0xff] %v760_v11  ;;  %v578_v15 = vpop.f32.mrb[4].mxu0 }
 0x1da   : > { %v761_v18 = vadd.f32 %v578_v15, %v312_v13  ;;  %v580_v19 = vpop.f32.mrb[5].mxu0  ;;  %v332_v15 = vld [vmem:[#allocation2 + $0xc0] sm:$0xff] }
 0x1db   : > { %v762_v21 = vadd.f32 %v580_v19, %v313_v14 }
 0x1dc   : > { %825 = vst [vmem:[#allocation2 + $0x20] sm:$0xff] %v761_v18  ;;  %v333_v18 = vld [vmem:[#allocation2 + $0xc8] sm:$0xff] }
 0x1dd   : > { %826 = vst [vmem:[#allocation2 + $0x28] sm:$0xff] %v762_v21  ;;  %v584_v24 = vpop.f32.mrb[6].mxu0 }
 0x1de   : > { %v763_v26 = vadd.f32 %v584_v24, %v314_v22  ;;  %v586_v27 = vpop.f32.mrb[7].mxu0  ;;  %v334_v24 = vld [vmem:[#allocation2 + $0xd0] sm:$0xff] }
 0x1df   : > { %v764_v25 = vadd.f32 %v586_v27, %v315_v23 }
 0x1e0   : > { %827 = vst [vmem:[#allocation2 + $0x30] sm:$0xff] %v763_v26  ;;  %v335_v26 = vld [vmem:[#allocation2 + $0xd8] sm:$0xff] }
 0x1e1   : > { %828 = vst [vmem:[#allocation2 + $0x38] sm:$0xff] %v764_v25  ;;  %v590_v29 = vpop.f32.mrb[8].mxu0 }
 0x1e2   : > { %v765_v32 = vadd.f32 %v590_v29, %v316_v28  ;;  %v592_v34 = vpop.f32.mrb[9].mxu0  ;;  %v336_v29 = vld [vmem:[#allocation2 + $0xe0] sm:$0xff] }
 0x1e3   : > { %v766_v35 = vadd.f32 %v592_v34, %v317_v30 }
 0x1e4   : > { %829 = vst [vmem:[#allocation2 + $0x40] sm:$0xff] %v765_v32  ;;  %v337_v32 = vld [vmem:[#allocation2 + $0xe8] sm:$0xff] }
 0x1e5   : > { %830 = vst [vmem:[#allocation2 + $0x48] sm:$0xff] %v766_v35  ;;  %v596_v38 = vpop.f32.mrb[10].mxu0 }
 0x1e6   : > { %v767_v39 = vadd.f32 %v596_v38, %v318_v36  ;;  %v598_v41 = vpop.f32.mrb[11].mxu0  ;;  %v338_v38 = vld [vmem:[#allocation2 + $0xf0] sm:$0xff] }
 0x1e7   : > { %v768_v16 = vadd.f32 %v598_v41, %v319_v37 }
 0x1e8   : > { %831 = vst [vmem:[#allocation2 + $0x50] sm:$0xff] %v767_v39  ;;  %v339_v39 = vld [vmem:[#allocation2 + $0xf8] sm:$0xff] }
 0x1e9   : > { %832 = vst [vmem:[#allocation2 + $0x58] sm:$0xff] %v768_v16  ;;  %v602_v4 = vpop.f32.mrb[12].mxu0 }
 0x1ea   : > { %v769_v43 = vadd.f32 %v602_v4, %v320_v17  ;;  %v604_v44 = vpop.f32.mrb[13].mxu0  ;;  %v340_v4 = vld [vmem:[#allocation2 + $0x100] sm:$0xff] }
 0x1eb   : > { %v770_v31 = vadd.f32 %v604_v44, %v321_v3 }
 0x1ec   : > { %833 = vst [vmem:[#allocation2 + $0x60] sm:$0xff] %v769_v43  ;;  %v341_v43 = vld [vmem:[#allocation2 + $0x108] sm:$0xff] }
 0x1ed   : > { %834 = vst [vmem:[#allocation2 + $0x68] sm:$0xff] %v770_v31  ;;  %v608_v12 = vpop.f32.mrb[14].mxu0 }
 0x1ee   : > { %v771_v45 = vadd.f32 %v608_v12, %v322_v40  ;;  %v610_v46 = vpop.f32.mrb[15].mxu0  ;;  %v342_v12 = vld [vmem:[#allocation2 + $0x110] sm:$0xff] }
 0x1ef   : > { %v772_v47 = vadd.f32 %v610_v46, %v323_v9 }
 0x1f0   : > { %835 = vst [vmem:[#allocation2 + $0x70] sm:$0xff] %v771_v45  ;;  %v343_v45 = vld [vmem:[#allocation2 + $0x118] sm:$0xff] }
 0x1f1   : > { %836 = vst [vmem:[#allocation2 + $0x78] sm:$0xff] %v772_v47  ;;  %v614_v20 = vpop.f32.mrb[16].mxu0 }
 0x1f2   : > { %v773_v33 = vadd.f32 %v614_v20, %v324_v48  ;;  %v616_v50 = vpop.f32.mrb[17].mxu0  ;;  %v344_v20 = vld [vmem:[#allocation2 + $0x120] sm:$0xff] }
 0x1f3   : > { %v774_v52 = vadd.f32 %v616_v50, %v325_v49 }
 0x1f4   : > { %837 = vst [vmem:[#allocation2 + $0x80] sm:$0xff] %v773_v33  ;;  %v345_v33 = vld [vmem:[#allocation2 + $0x128] sm:$0xff] }
 0x1f5   : > { %838 = vst [vmem:[#allocation2 + $0x88] sm:$0xff] %v774_v52  ;;  %v620_v51 = vpop.f32.mrb[18].mxu0 }
 0x1f6   : > { %v775_v56 = vadd.f32 %v620_v51, %v326_v54  ;;  %v622_v57 = vpop.f32.mrb[19].mxu0  ;;  %v346_v51 = vld [vmem:[#allocation2 + $0x130] sm:$0xff] }
 0x1f7   : > { %v776_v58 = vadd.f32 %v622_v57, %v327_v42 }
 0x1f8   : > { %839 = vst [vmem:[#allocation2 + $0x90] sm:$0xff] %v775_v56  ;;  %v347_v56 = vld [vmem:[#allocation2 + $0x138] sm:$0xff] }
 0x1f9   : > { %840 = vst [vmem:[#allocation2 + $0x98] sm:$0xff] %v776_v58  ;;  %v626_v61 = vpop.f32.mrb[20].mxu0 }
 0x1fa   : > { %v777_v62 = vadd.f32 %v626_v61, %v328_v59  ;;  %v628_v63 = vpop.f32.mrb[21].mxu0  ;;  %v348_v61 = vld [vmem:[#allocation2 + $0x140] sm:$0xff] }
 0x1fb   : > { %v778_v0 = vadd.f32 %v628_v63, %v329_v60 }
 0x1fc   : > { %841 = vst [vmem:[#allocation2 + $0xa0] sm:$0xff] %v777_v62  ;;  %v349_v62 = vld [vmem:[#allocation2 + $0x148] sm:$0xff] }
 0x1fd   : > { %842 = vst [vmem:[#allocation2 + $0xa8] sm:$0xff] %v778_v0  ;;  %v632_v10 = vpop.f32.mrb[22].mxu0 }
 0x1fe   : > { %v779_v11 = vadd.f32 %v632_v10, %v330_v1  ;;  %v634_v13 = vpop.f32.mrb[23].mxu0  ;;  %v350_v10 = vld [vmem:[#allocation2 + $0x150] sm:$0xff] }
 0x1ff   : > { %v780_v14 = vadd.f32 %v634_v13, %v331_v7 }
 0x200   : > { %843 = vst [vmem:[#allocation2 + $0xb0] sm:$0xff] %v779_v11  ;;  %v351_v11 = vld [vmem:[#allocation2 + $0x158] sm:$0xff] }
 0x201   : > { %844 = vst [vmem:[#allocation2 + $0xb8] sm:$0xff] %v780_v14  ;;  %v638_v19 = vpop.f32.mrb[24].mxu0 }
 0x202   : > { %v781_v21 = vadd.f32 %v638_v19, %v332_v15  ;;  %v640_v22 = vpop.f32.mrb[25].mxu0  ;;  %v352_v19 = vld [vmem:[#allocation2 + $0x160] sm:$0xff] }
 0x203   : > { %v782_v23 = vadd.f32 %v640_v22, %v333_v18 }
 0x204   : > { %845 = vst [vmem:[#allocation2 + $0xc0] sm:$0xff] %v781_v21  ;;  %v353_v21 = vld [vmem:[#allocation2 + $0x168] sm:$0xff] }
 0x205   : > { %846 = vst [vmem:[#allocation2 + $0xc8] sm:$0xff] %v782_v23  ;;  %v644_v27 = vpop.f32.mrb[26].mxu0 }
 0x206   : > { %v783_v25 = vadd.f32 %v644_v27, %v334_v24  ;;  %v646_v28 = vpop.f32.mrb[27].mxu0  ;;  %v354_v27 = vld [vmem:[#allocation2 + $0x170] sm:$0xff] }
 0x207   : > { %v784_v30 = vadd.f32 %v646_v28, %v335_v26 }
 0x208   : > { %847 = vst [vmem:[#allocation2 + $0xd0] sm:$0xff] %v783_v25  ;;  %v355_v25 = vld [vmem:[#allocation2 + $0x178] sm:$0xff] }
 0x209   : > { %848 = vst [vmem:[#allocation2 + $0xd8] sm:$0xff] %v784_v30  ;;  %v650_v34 = vpop.f32.mrb[28].mxu0 }
 0x20a   : > { %v785_v35 = vadd.f32 %v650_v34, %v336_v29  ;;  %v652_v36 = vpop.f32.mrb[29].mxu0  ;;  %v356_v34 = vld [vmem:[#allocation2 + $0x180] sm:$0xff] }
 0x20b   : > { %v786_v37 = vadd.f32 %v652_v36, %v337_v32 }
 0x20c   : > { %849 = vst [vmem:[#allocation2 + $0xe0] sm:$0xff] %v785_v35  ;;  %v357_v35 = vld [vmem:[#allocation2 + $0x188] sm:$0xff] }
 0x20d   : > { %850 = vst [vmem:[#allocation2 + $0xe8] sm:$0xff] %v786_v37  ;;  %v656_v41 = vpop.f32.mrb[30].mxu0 }
 0x20e   : > { %v787_v16 = vadd.f32 %v656_v41, %v338_v38  ;;  %v658_v17 = vpop.f32.mrb[31].mxu0  ;;  %v358_v41 = vld [vmem:[#allocation2 + $0x190] sm:$0xff] }
 0x20f   : > { %v788_v3 = vadd.f32 %v658_v17, %v339_v39 }
 0x210   : > { %851 = vst [vmem:[#allocation2 + $0xf0] sm:$0xff] %v787_v16  ;;  %v359_v16 = vld [vmem:[#allocation2 + $0x198] sm:$0xff] }
 0x211   : > { %852 = vst [vmem:[#allocation2 + $0xf8] sm:$0xff] %v788_v3  ;;  %v662_v44 = vpop.f32.mrb[32].mxu0 }
 0x212   : > { %v789_v31 = vadd.f32 %v662_v44, %v340_v4  ;;  %v664_v40 = vpop.f32.mrb[33].mxu0  ;;  %v360_v44 = vld [vmem:[#allocation2 + $0x1a0] sm:$0xff] }
 0x213   : > { %v790_v9 = vadd.f32 %v664_v40, %v341_v43 }
 0x214   : > { %853 = vst [vmem:[#allocation2 + $0x100] sm:$0xff] %v789_v31  ;;  %v361_v31 = vld [vmem:[#allocation2 + $0x1a8] sm:$0xff] }
 0x215   : > { %854 = vst [vmem:[#allocation2 + $0x108] sm:$0xff] %v790_v9  ;;  %v668_v46 = vpop.f32.mrb[34].mxu0 }
 0x216   : > { %v791_v47 = vadd.f32 %v668_v46, %v342_v12  ;;  %v670_v48 = vpop.f32.mrb[35].mxu0  ;;  %v362_v46 = vld [vmem:[#allocation2 + $0x1b0] sm:$0xff] }
 0x217   : > { %v792_v49 = vadd.f32 %v670_v48, %v343_v45 }
 0x218   : > { %855 = vst [vmem:[#allocation2 + $0x110] sm:$0xff] %v791_v47  ;;  %v363_v47 = vld [vmem:[#allocation2 + $0x1b8] sm:$0xff] }
 0x219   : > { %856 = vst [vmem:[#allocation2 + $0x118] sm:$0xff] %v792_v49  ;;  %v674_v50 = vpop.f32.mrb[36].mxu0 }
 0x21a   : > { %v793_v52 = vadd.f32 %v674_v50, %v344_v20  ;;  %v676_v54 = vpop.f32.mrb[37].mxu0  ;;  %v364_v50 = vld [vmem:[#allocation2 + $0x1c0] sm:$0xff] }
 0x21b   : > { %v794_v42 = vadd.f32 %v676_v54, %v345_v33 }
 0x21c   : > { %857 = vst [vmem:[#allocation2 + $0x120] sm:$0xff] %v793_v52  ;;  %v365_v52 = vld [vmem:[#allocation2 + $0x1c8] sm:$0xff] }
 0x21d   : > { %858 = vst [vmem:[#allocation2 + $0x128] sm:$0xff] %v794_v42  ;;  %v680_v57 = vpop.f32.mrb[38].mxu0 }
 0x21e   : > { %v795_v58 = vadd.f32 %v680_v57, %v346_v51  ;;  %v682_v59 = vpop.f32.mrb[39].mxu0  ;;  %v366_v57 = vld [vmem:[#allocation2 + $0x1d0] sm:$0xff] }
 0x21f   : > { %v796_v60 = vadd.f32 %v682_v59, %v347_v56 }
 0x220   : > { %859 = vst [vmem:[#allocation2 + $0x130] sm:$0xff] %v795_v58  ;;  %v367_v58 = vld [vmem:[#allocation2 + $0x1d8] sm:$0xff] }
 0x221   : > { %860 = vst [vmem:[#allocation2 + $0x138] sm:$0xff] %v796_v60  ;;  %v686_v63 = vpop.f32.mrb[40].mxu0 }
 0x222   : > { %v797_v0 = vadd.f32 %v686_v63, %v348_v61  ;;  %v688_v1 = vpop.f32.mrb[41].mxu0  ;;  %v368_v63 = vld [vmem:[#allocation2 + $0x1e0] sm:$0xff] }
 0x223   : > { %v798_v7 = vadd.f32 %v688_v1, %v349_v62 }
 0x224   : > { %861 = vst [vmem:[#allocation2 + $0x140] sm:$0xff] %v797_v0  ;;  %v369_v0 = vld [vmem:[#allocation2 + $0x1e8] sm:$0xff] }
 0x225   : > { %862 = vst [vmem:[#allocation2 + $0x148] sm:$0xff] %v798_v7  ;;  %v692_v13 = vpop.f32.mrb[42].mxu0 }
 0x226   : > { %v799_v14 = vadd.f32 %v692_v13, %v350_v10  ;;  %v694_v15 = vpop.f32.mrb[43].mxu0  ;;  %v370_v13 = vld [vmem:[#allocation2 + $0x1f0] sm:$0xff] }
 0x227   : > { %v800_v18 = vadd.f32 %v694_v15, %v351_v11 }
 0x228   : > { %863 = vst [vmem:[#allocation2 + $0x150] sm:$0xff] %v799_v14  ;;  %v371_v14 = vld [vmem:[#allocation2 + $0x1f8] sm:$0xff] }
 0x229   : > { %864 = vst [vmem:[#allocation2 + $0x158] sm:$0xff] %v800_v18  ;;  %v698_v22 = vpop.f32.mrb[44].mxu0 }
 0x22a   : > { %v801_v23 = vadd.f32 %v698_v22, %v352_v19  ;;  %v700_v24 = vpop.f32.mrb[45].mxu0 }
 0x22b   : > { %v802_v26 = vadd.f32 %v700_v24, %v353_v21 }
 0x22c   : > { %865 = vst [vmem:[#allocation2 + $0x160] sm:$0xff] %v801_v23 }
 0x22d   : > { %866 = vst [vmem:[#allocation2 + $0x168] sm:$0xff] %v802_v26  ;;  %v704_v28 = vpop.f32.mrb[46].mxu0 }
 0x22e   : > { %v803_v30 = vadd.f32 %v704_v28, %v354_v27  ;;  %v706_v29 = vpop.f32.mrb[47].mxu0 }
 0x22f   : > { %v804_v32 = vadd.f32 %v706_v29, %v355_v25 }
 0x230   : > { %867 = vst [vmem:[#allocation2 + $0x170] sm:$0xff] %v803_v30 }
 0x231   : > { %868 = vst [vmem:[#allocation2 + $0x178] sm:$0xff] %v804_v32  ;;  %v710_v36 = vpop.f32.mrb[48].mxu0 }
 0x232   : > { %v805_v37 = vadd.f32 %v710_v36, %v356_v34  ;;  %v712_v38 = vpop.f32.mrb[49].mxu0 }
 0x233   : > { %v806_v39 = vadd.f32 %v712_v38, %v357_v35 }
 0x234   : > { %869 = vst [vmem:[#allocation2 + $0x180] sm:$0xff] %v805_v37 }
 0x235   : > { %870 = vst [vmem:[#allocation2 + $0x188] sm:$0xff] %v806_v39  ;;  %v716_v17 = vpop.f32.mrb[50].mxu0 }
 0x236   : > { %v807_v3 = vadd.f32 %v716_v17, %v358_v41  ;;  %v718_v4 = vpop.f32.mrb[51].mxu0 }
 0x237   : > { %v808_v43 = vadd.f32 %v718_v4, %v359_v16 }
 0x238   : > { %871 = vst [vmem:[#allocation2 + $0x190] sm:$0xff] %v807_v3 }
 0x239   : > { %872 = vst [vmem:[#allocation2 + $0x198] sm:$0xff] %v808_v43  ;;  %v722_v40 = vpop.f32.mrb[52].mxu0 }
 0x23a   : > { %v809_v9 = vadd.f32 %v722_v40, %v360_v44  ;;  %v724_v12 = vpop.f32.mrb[53].mxu0 }
 0x23b   : > { %v810_v45 = vadd.f32 %v724_v12, %v361_v31 }
 0x23c   : > { %873 = vst [vmem:[#allocation2 + $0x1a0] sm:$0xff] %v809_v9 }
 0x23d   : > { %874 = vst [vmem:[#allocation2 + $0x1a8] sm:$0xff] %v810_v45  ;;  %v728_v48 = vpop.f32.mrb[54].mxu0 }
 0x23e   : > { %v811_v49 = vadd.f32 %v728_v48, %v362_v46  ;;  %v730_v20 = vpop.f32.mrb[55].mxu0 }
 0x23f   : > { %v812_v33 = vadd.f32 %v730_v20, %v363_v47 }
 0x240   : > { %875 = vst [vmem:[#allocation2 + $0x1b0] sm:$0xff] %v811_v49 }
 0x241   : > { %876 = vst [vmem:[#allocation2 + $0x1b8] sm:$0xff] %v812_v33  ;;  %v734_v54 = vpop.f32.mrb[56].mxu0 }
 0x242   : > { %v813_v42 = vadd.f32 %v734_v54, %v364_v50  ;;  %v736_v51 = vpop.f32.mrb[57].mxu0 }
 0x243   : > { %v814_v56 = vadd.f32 %v736_v51, %v365_v52 }
 0x244   : > { %877 = vst [vmem:[#allocation2 + $0x1c0] sm:$0xff] %v813_v42 }
 0x245   : > { %878 = vst [vmem:[#allocation2 + $0x1c8] sm:$0xff] %v814_v56  ;;  %v740_v59 = vpop.f32.mrb[58].mxu0 }
 0x246   : > { %v815_v60 = vadd.f32 %v740_v59, %v366_v57  ;;  %v742_v61 = vpop.f32.mrb[59].mxu0 }
 0x247   : > { %v816_v62 = vadd.f32 %v742_v61, %v367_v58 }
 0x248   : > { %879 = vst [vmem:[#allocation2 + $0x1d0] sm:$0xff] %v815_v60 }
 0x249   : > { %880 = vst [vmem:[#allocation2 + $0x1d8] sm:$0xff] %v816_v62  ;;  %v746_v1 = vpop.f32.mrb[60].mxu0 }
 0x24a   : > { %v817_v7 = vadd.f32 %v746_v1, %v368_v63  ;;  %v748_v10 = vpop.f32.mrb[61].mxu0 }
 0x24b   : > { %v818_v11 = vadd.f32 %v748_v10, %v369_v0  ;;  %995 = sbr.rel (%p1605_p6) target bundleno = 1583 (0x62f), region = 44 }
 0x24c   : > { %881 = vst [vmem:[#allocation2 + $0x1e0] sm:$0xff] %v817_v7 }
 0x24d   : > { %882 = vst [vmem:[#allocation2 + $0x1e8] sm:$0xff] %v818_v11  ;;  %v752_v15 = vpop.f32.mrb[62].mxu0 }
 0x24e   : > { %v819_v18 = vadd.f32 %v752_v15, %v370_v13  ;;  %v754_v19 = vpop.f32.mrb[63].mxu0 }
 0x24f   : > { %v820_v21 = vadd.f32 %v754_v19, %v371_v14 }
 0x250   : > { %883 = vst [vmem:[#allocation2 + $0x1f0] sm:$0xff] %v819_v18 }
 0x251   : > { %884 = vst [vmem:[#allocation2 + $0x1f8] sm:$0xff] %v820_v21 }
 0x252   : > { %v2810_v22 = vld [vmem:[#allocation2 + $0x8] sm:$0xff]  ;;  %v2812_v23 = vld [vmem:[#allocation2 + $0x18] sm:$0xff]  ;;  %v2825_v30 = vadd.s32 8, %v2739_v5  ;;  %v2828_v29 = vadd.s32 16, %v2739_v5  ;;  %v2835_v35 = vadd.s32 24, %v2739_v5  ;;  %v2838_v36 = vadd.s32 32, %v2739_v5 }
 0x253   : > { %v2814_v24 = vld [vmem:[#allocation2 + $0x28] sm:$0xff]  ;;  %v2816_v26 = vld [vmem:[#allocation2 + $0x38] sm:$0xff]  ;;  %v2841_v37 = vadd.s32 40, %v2739_v5  ;;  %v2844_v38 = vadd.s32 48, %v2739_v5  ;;  %v2849_v41 = vadd.s32 56, %v2739_v5  ;;  %v2852_v16 = vadd.s32 64, %v2739_v5 }
 0x254   : > { %v2818_v27 = vld [vmem:[#allocation2 + $0x48] sm:$0xff]  ;;  %v2820_v25 = vld [vmem:[#allocation2 + $0x58] sm:$0xff]  ;;  %v2855_v17 = vadd.s32 72, %v2739_v5  ;;  %v2858_v3 = vadd.s32 80, %v2739_v5  ;;  %v2865_v44 = vadd.s32 88, %v2739_v5  ;;  %v2868_v31 = vadd.s32 96, %v2739_v5 }
 0x255   : > { %3419 = vst [vmem:[#allocation15_spill] sm:$0xff] %v2820_v25  ;;  %v2822_v28 = vld [vmem:[#allocation2 + $0x68] sm:$0xff]  ;;  %v2830_v32 = vld [vmem:[#allocation2 + $0x78] sm:$0xff]  ;;  %v2871_v40 = vadd.s32 104, %v2739_v5  ;;  %v2874_v9 = vadd.s32 112, %v2739_v5  ;;  %v2879_v45 = vadd.s32 120, %v2739_v5 }
 0x256   : > { %3420 = vst [vmem:[#allocation16_spill] sm:$0xff] %v2822_v28  ;;  %3421 = vst [vmem:[#allocation17_spill] sm:$0xff] %v2830_v32  ;;  %v2832_v34 = vld [vmem:[#allocation2 + $0x88] sm:$0xff]  ;;  %v2846_v39 = vld [vmem:[#allocation2 + $0x98] sm:$0xff]  ;;  %v2882_v46 = vadd.s32 128, %v2739_v5  ;;  %v2885_v47 = vadd.s32 136, %v2739_v5 }
 0x257   : > { %3422 = vst [vmem:[#allocation18_spill] sm:$0xff] %v2832_v34  ;;  %3423 = vst [vmem:[#allocation19_spill] sm:$0xff] %v2846_v39  ;;  %v2860_v4 = vld [vmem:[#allocation2 + $0xa8] sm:$0xff]  ;;  %v2862_v43 = vld [vmem:[#allocation2 + $0xb8] sm:$0xff]  ;;  %v2888_v48 = vadd.s32 144, %v2739_v5  ;;  %v2895_v33 = vadd.s32 152, %v2739_v5 }
 0x258   : > { %3424 = vst [vmem:[#allocation20_spill] sm:$0xff] %v2860_v4  ;;  %3425 = vst [vmem:[#allocation21_spill] sm:$0xff] %v2862_v43  ;;  %v2876_v12 = vld [vmem:[#allocation2 + $0xc8] sm:$0xff]  ;;  %v2890_v49 = vld [vmem:[#allocation2 + $0xd8] sm:$0xff]  ;;  %v2898_v50 = vadd.s32 160, %v2739_v5  ;;  %v2901_v52 = vadd.s32 168, %v2739_v5 }
 0x259   : > { %3426 = vst [vmem:[#allocation22_spill] sm:$0xff] %v2876_v12  ;;  %3427 = vst [vmem:[#allocation23_spill] sm:$0xff] %v2890_v49  ;;  %v2892_v20 = vld [vmem:[#allocation2 + $0xe8] sm:$0xff]  ;;  %v2904_v54 = vadd.s32 176, %v2739_v5  ;;  %v2906_v42 = vld [vmem:[#allocation2 + $0xf8] sm:$0xff]  ;;  %v2911_v56 = vadd.s32 184, %v2739_v5 }
 0x25a   : > { %3428 = vst [vmem:[#allocation24_spill] sm:$0xff] %v2892_v20  ;;  %3429 = vst [vmem:[#allocation25_spill] sm:$0xff] %v2906_v42  ;;  %v2908_v51 = vld [vmem:[#allocation2 + $0x100] sm:$0xff]  ;;  %v2914_v57 = vadd.s32 192, %v2739_v5  ;;  %v2917_v58 = vadd.s32 200, %v2739_v5  ;;  %v2920_v59 = vand.u32 127, %v887_v2 }
 0x25b   : > { %3430 = vst [vmem:[#allocation26_spill] sm:$0xff] %v2908_v51  ;;  %v2922_v60 = vld [vmem:[#allocation2 + $0x110] sm:$0xff]  ;;  %v2925_v61 = vadd.s32 208, %v2739_v5  ;;  %v2928_v62 = vadd.s32 216, %v2739_v5  ;;  %v2931_v63 = vadd.s32 224, %v2739_v5  ;;  %v2934_v0 = vadd.s32 232, %v2739_v5 }
 0x25c   : > { %3431 = vst [vmem:[#allocation27_spill] sm:$0xff] %v2922_v60  ;;  %v2936_v1 = vld [vmem:[#allocation2 + $0x120] sm:$0xff]  ;;  %v2938_v7 = vld [vmem:[#allocation2 + $0x130] sm:$0xff]  ;;  %v2941_v2 = vadd.s32 240, %v2739_v5  ;;  %v2944_v10 = vadd.s32 248, %v2739_v5  ;;  %v2947_v11 = vadd.s32 128, %v2920_v59  ;;  %vm1096_vm2 = vcmp.eq.s32.totalorder %v2739_v5, %v2920_v59 }
 0x25d   : > { %3432 = vst [vmem:[#allocation28_spill] sm:$0xff] %v2936_v1  ;;  %3433 = vst [vmem:[#allocation29_spill] sm:$0xff] %v2938_v7  ;;  %v2949_v13 = vld [vmem:[#allocation2 + $0x140] sm:$0xff]  ;;  %vm1098_vm3 = vcmp.eq.s32.totalorder %v2825_v30, %v2920_v59  ;;  %vm1100_vm4 = vcmp.eq.s32.totalorder %v2828_v29, %v2920_v59  ;;  %vm1102_vm5 = vcmp.eq.s32.totalorder %v2835_v35, %v2920_v59  ;;  %v2959_v14 = vld [vmem:[#allocation2 + $0x150] sm:$0xff]  ;;  %s3241_s21 = smov 0  }
 0x25e   : > { %3434 = vst [vmem:[#allocation30_spill] sm:$0xff] %v2949_v13  ;;  %3435 = vst [vmem:[#allocation31_spill] sm:$0xff] %v2959_v14  ;;  %v2961_v15 = vld [vmem:[#allocation2 + $0x160] sm:$0xff]  ;;  %vm1104_vm6 = vcmp.eq.s32.totalorder %v2838_v36, %v2920_v59  ;;  %vm1106_vm7 = vcmp.eq.s32.totalorder %v2841_v37, %v2920_v59  ;;  %vm1108_vm8 = vcmp.eq.s32.totalorder %v2844_v38, %v2920_v59  ;;  %v2971_v18 = vld [vmem:[#allocation2 + $0x170] sm:$0xff] }
 0x25f   : > { %3436 = vst [vmem:[#allocation32_spill] sm:$0xff] %v2961_v15  ;;  %vm1110_vm9 = vcmp.eq.s32.totalorder %v2849_v41, %v2920_v59  ;;  %3437 = vst [vmem:[#allocation33_spill] sm:$0xff] %v2971_v18  ;;  %vm1112_vm10 = vcmp.eq.s32.totalorder %v2852_v16, %v2920_v59  ;;  %v2981_v19 = vld [vmem:[#allocation2 + $0x180] sm:$0xff]  ;;  %v2983_v21 = vld [vmem:[#allocation2 + $0x190] sm:$0xff]  ;;  %vm1141_vm12 = vcmp.eq.s32.totalorder %v2904_v54, %v2947_v11 }
 0x260   : > { %3438 = vst [vmem:[#allocation34_spill] sm:$0xff] %v2981_v19  ;;  %3439 = vst [vmem:[#allocation35_spill] sm:$0xff] %v2983_v21  ;;  %v2993_v55 = vld [vmem:[#allocation2 + $0x1a0] sm:$0xff]  ;;  %v3003_v21 = vld [vmem:[#allocation2 + $0x1b0] sm:$0xff]  ;;  %vm1149_vm11 = vcmp.eq.s32.totalorder %v2925_v61, %v2947_v11  ;;  %vm1153_vm14 = vcmp.eq.s32.totalorder %v2931_v63, %v2947_v11  ;;  %vm1155_vm15 = vcmp.eq.s32.totalorder %v2934_v0, %v2947_v11 }
 0x261   : > { %3440 = vst [vmem:[#allocation36_spill] sm:$0xff] %v2993_v55  ;;  %v996_v53 = vld [vmem:[#allocation2] sm:$0xff]  ;;  %3441 = vst [vmem:[#allocation37_spill] sm:$0xff] %v3003_v21  ;;  %v998_v55 = vld [vmem:[#allocation2 + $0x10] sm:$0xff]  ;;  %vm1157_vm0 = vcmp.eq.s32.totalorder %v2941_v2, %v2947_v11  ;;  %vm1159_vm13 = vcmp.eq.s32.totalorder %v2944_v10, %v2947_v11 }
 0x262   : > { %v3005_v19 = vld [vmem:[#allocation2 + $0x1c0] sm:$0xff]  ;;  %v3015_v15 = vld [vmem:[#allocation2 + $0x1d0] sm:$0xff]  ;;  %v1033_v43 = vld [vmem:[#allocation2 + $0x128] sm:$0xff] }
 0x263   : > { %3442 = vst [vmem:[#allocation38_spill] sm:$0xff] %v3005_v19  ;;  %v1000_v18 = vld [vmem:[#allocation2 + $0x20] sm:$0xff]  ;;  %3443 = vst [vmem:[#allocation39_spill] sm:$0xff] %v3015_v15  ;;  %v1002_v19 = vld [vmem:[#allocation2 + $0x30] sm:$0xff]  ;;  %v2314_v15 = vmov 0.0  }
 0x264   : > { %v3025_v21 = vld [vmem:[#allocation2 + $0x1e0] sm:$0xff]  ;;  %v3027_v14 = vld [vmem:[#allocation2 + $0x1f0] sm:$0xff]  ;;  %v1160_v13 = vsel %vm1096_vm2, 0.001, %v2314_v15  ;;  %v1166_v5 = vsel %vm1102_vm5, 0.001, %v2314_v15  ;;  %vm3446_vm2 = vcmp.eq.s32.totalorder %v2855_v17, %v2920_v59  ;;  %vm3449_vm5 = vcmp.eq.s32.totalorder %v2868_v31, %v2920_v59 }
 0x265   : > { %3444 = vst [vmem:[#allocation40_spill] sm:$0xff] %v3025_v21  ;;  %3445 = vst [vmem:[#allocation41_spill] sm:$0xff] %v3027_v14  ;;  %v1004_v7 = vld [vmem:[#allocation2 + $0x40] sm:$0xff]  ;;  %v1006_v1 = vld [vmem:[#allocation2 + $0x50] sm:$0xff]  ;;  %v1162_v14 = vsel %vm1098_vm3, 0.001, %v2314_v15  ;;  %v3049_v60 = vadd.f32 %v1160_v13, %v996_v53  ;;  %vm3447_vm3 = vcmp.eq.s32.totalorder %v2858_v3, %v2920_v59  ;;  %v3091_v16 = vadd.f32 %v1166_v5, %v1002_v19 }
 0x266   : > { %v1164_v21 = vsel %vm1100_vm4, 0.001, %v2314_v15  ;;  %v1008_v51 = vld [vmem:[#allocation2 + $0x60] sm:$0xff]  ;;  %v1168_v42 = vsel %vm1104_vm6, 0.001, %v2314_v15  ;;  %v3063_v29 = vadd.f32 %v1162_v14, %v998_v55  ;;  %v1010_v53 = vld [vmem:[#allocation2 + $0x70] sm:$0xff]  ;;  %vm3448_vm4 = vcmp.eq.s32.totalorder %v2865_v44, %v2920_v59 }
 0x267   : > { %v1170_v30 = vsel %vm1106_vm7, 0.001, %v2314_v15  ;;  %v1172_v13 = vsel %vm1108_vm8, 0.001, %v2314_v15  ;;  %v1174_v35 = vsel %vm1110_vm9, 0.001, %v2314_v15  ;;  %v3077_v37 = vadd.f32 %v1164_v21, %v1000_v18 }
 0x268   : > { %v1176_v36 = vsel %vm1112_vm10, 0.001, %v2314_v15  ;;  %v1012_v55 = vld [vmem:[#allocation2 + $0x80] sm:$0xff]  ;;  %v1178_v14 = vsel %vm3446_vm2, 0.001, %v2314_v15  ;;  %v1014_v18 = vld [vmem:[#allocation2 + $0x90] sm:$0xff]  ;;  %vm3450_vm6 = vcmp.eq.s32.totalorder %v2871_v40, %v2920_v59  ;;  %vm3451_vm7 = vcmp.eq.s32.totalorder %v2874_v9, %v2920_v59 }
 0x269   : > { %v1180_v38 = vsel %vm3447_vm3, 0.001, %v2314_v15  ;;  %v1182_v41 = vsel %vm3448_vm4, 0.001, %v2314_v15  ;;  %v1184_v21 = vsel %vm3449_vm5, 0.001, %v2314_v15  ;;  %v3105_v44 = vadd.f32 %v1168_v42, %v1004_v7 }
 0x26a   : > { %v1186_v17 = vsel %vm3450_vm6, 0.001, %v2314_v15  ;;  %v1188_v3 = vsel %vm3451_vm7, 0.001, %v2314_v15  ;;  %v1016_v19 = vld [vmem:[#allocation2 + $0xa0] sm:$0xff]  ;;  %v1018_v5 = vld [vmem:[#allocation2 + $0xb0] sm:$0xff]  ;;  %vm3453_vm8 = vcmp.eq.s32.totalorder %v2879_v45, %v2920_v59  ;;  %vm3454_vm9 = vcmp.eq.s32.totalorder %v2882_v46, %v2947_v11 }
 0x26b   : > { %3452 = vst [vmem:[#allocation42_spill] sm:$0xff] %v3105_v44  ;;  %v1190_v31 = vsel %vm3453_vm8, 0.001, %v2314_v15  ;;  %v1193_v40 = vsel %vm3454_vm9, 0.001, %v2314_v15  ;;  %vm3455_vm10 = vcmp.eq.s32.totalorder %v2885_v47, %v2947_v11  ;;  %v3119_v20 = vadd.f32 %v1170_v30, %v1006_v1  ;;  %v1020_v42 = vld [vmem:[#allocation2 + $0xc0] sm:$0xff] }
 0x26c   : > { %v1195_v9 = vsel %vm3455_vm10, 0.001, %v2314_v15  ;;  %v1022_v7 = vld [vmem:[#allocation2 + $0xd0] sm:$0xff]  ;;  %v1024_v49 = vld [vmem:[#allocation2 + $0xe0] sm:$0xff]  ;;  %vm3457_vm2 = vcmp.eq.s32.totalorder %v2888_v48, %v2947_v11  ;;  %vm3458_vm3 = vcmp.eq.s32.totalorder %v2895_v33, %v2947_v11  ;;  %vm3459_vm4 = vcmp.eq.s32.totalorder %v2898_v50, %v2947_v11  ;;  %v1029_v1 = vld [vmem:[#allocation2 + $0x108] sm:$0xff] }
 0x26d   : > { %3456 = vst [vmem:[#allocation43_spill] sm:$0xff] %v3119_v20  ;;  %v1026_v12 = vld [vmem:[#allocation2 + $0xf0] sm:$0xff]  ;;  %v1197_v45 = vsel %vm3457_vm2, 0.001, %v2314_v15  ;;  %v1199_v46 = vsel %vm3458_vm3, 0.001, %v2314_v15  ;;  %v3133_v59 = vadd.f32 %v1172_v13, %v1008_v51  ;;  %vm3461_vm5 = vcmp.eq.s32.totalorder %v2901_v52, %v2947_v11 }
 0x26e   : > { %v1201_v47 = vsel %vm3459_vm4, 0.001, %v2314_v15  ;;  %v1031_v30 = vld [vmem:[#allocation2 + $0x118] sm:$0xff]  ;;  %v1203_v48 = vsel %vm3461_vm5, 0.001, %v2314_v15  ;;  %vm3462_vm6 = vcmp.eq.s32.totalorder %v2911_v56, %v2947_v11  ;;  %v3147_v51 = vadd.f32 %v1174_v35, %v1010_v53  ;;  %v1037_v13 = vld [vmem:[#allocation2 + $0x148] sm:$0xff] }
 0x26f   : > { %3460 = vst [vmem:[#allocation44_spill] sm:$0xff] %v3133_v59  ;;  %v1035_v4 = vld [vmem:[#allocation2 + $0x138] sm:$0xff]  ;;  %v1205_v33 = vsel %vm1141_vm12, 0.001, %v2314_v15  ;;  %v1207_v50 = vsel %vm3462_vm6, 0.001, %v2314_v15  ;;  %vm3464_vm7 = vcmp.eq.s32.totalorder %v2914_v57, %v2947_v11  ;;  %vm3465_vm12 = vcmp.eq.s32.totalorder %v2917_v58, %v2947_v11 }
 0x270   : > { %3463 = vst [vmem:[#allocation45_spill] sm:$0xff] %v3147_v51  ;;  %v1039_v39 = vld [vmem:[#allocation2 + $0x158] sm:$0xff]  ;;  %v1041_v34 = vld [vmem:[#allocation2 + $0x168] sm:$0xff]  ;;  %v1209_v52 = vsel %vm3464_vm7, 0.001, %v2314_v15  ;;  %v3161_v53 = vadd.f32 %v1176_v36, %v1012_v55  ;;  %vm3467_vm8 = vcmp.eq.s32.totalorder %v2928_v62, %v2947_v11  ;;  %v3175_v51 = vadd.f32 %v1178_v14, %v1014_v18 }
 0x271   : > { %v1043_v59 = vld [vmem:[#allocation2 + $0x178] sm:$0xff]  ;;  %v1211_v54 = vsel %vm3465_vm12, 0.001, %v2314_v15  ;;  %v1213_v56 = vsel %vm1149_vm11, 0.001, %v2314_v15  ;;  %v1045_v61 = vld [vmem:[#allocation2 + $0x188] sm:$0xff]  ;;  %v3185_v55 = vadd.f32 %v1180_v38, %v1016_v19  ;;  %v3189_v18 = vadd.f32 %v1184_v21, %v1020_v42 }
 0x272   : > { %3466 = vst [vmem:[#allocation46_spill] sm:$0xff] %v3161_v53  ;;  %v1215_v35 = vsel %vm3467_vm8, 0.001, %v2314_v15  ;;  %v1217_v57 = vsel %vm1153_vm14, 0.001, %v2314_v15  ;;  %3468 = vst [vmem:[#allocation47_spill] sm:$0xff] %v3175_v51  ;;  %v3187_v53 = vadd.f32 %v1182_v41, %v1018_v5  ;;  %v3191_v51 = vadd.f32 %v1186_v17, %v1022_v7 }
 0x273   : > { %v1219_v58 = vsel %vm1155_vm15, 0.001, %v2314_v15  ;;  %v1047_v36 = vld [vmem:[#allocation2 + $0x198] sm:$0xff]  ;;  %v1221_v62 = vsel %vm1157_vm0, 0.001, %v2314_v15  ;;  %v1049_v0 = vld [vmem:[#allocation2 + $0x1a8] sm:$0xff]  ;;  %v3193_v28 = vadd.f32 %v1188_v3, %v1024_v49  ;;  %v3195_v2 = vadd.f32 %v1190_v31, %v1026_v12 }
 0x274   : > { %v1223_v63 = vsel %vm1159_vm13, 0.001, %v2314_v15  ;;  %v1051_v32 = vld [vmem:[#allocation2 + $0x1b8] sm:$0xff]  ;;  %v1053_v14 = vld [vmem:[#allocation2 + $0x1c8] sm:$0xff]  ;;  %v3197_v10 = vadd.f32 %v1193_v40, %v1029_v1  ;;  %v3199_v11 = vadd.f32 %v1195_v9, %v1031_v30  ;;  %v3201_v15 = vadd.f32 %v1197_v45, %v1033_v43  ;;  %v1288_v12 = vld [vmem:[#allocation3] sm:$0x3]  }
 0x275   : > { %v1055_v20 = vld [vmem:[#allocation2 + $0x1d8] sm:$0xff]  ;;  %v1057_v44 = vld [vmem:[#allocation2 + $0x1e8] sm:$0xff]  ;;  %v3203_v38 = vadd.f32 %v1199_v46, %v1035_v4  ;;  %v3205_v41 = vadd.f32 %v1201_v47, %v1037_v13  ;;  %v3207_v21 = vadd.f32 %v1203_v48, %v1039_v39  ;;  %v3209_v17 = vadd.f32 %v1205_v33, %v1041_v34 }
 0x276   : > { %v1059_v25 = vld [vmem:[#allocation2 + $0x1f8] sm:$0xff]  ;;  %v3211_v49 = vadd.f32 %v1207_v50, %v1043_v59  ;;  %v3213_v3 = vadd.f32 %v1209_v52, %v1045_v61  ;;  %v3215_v19 = vadd.f32 %v1211_v54, %v1047_v36  ;;  %v3217_v5 = vadd.f32 %v1213_v56, %v1049_v0 }
 0x277   : > { %v3219_v31 = vadd.f32 %v1215_v35, %v1051_v32  ;;  %v3221_v43 = vadd.f32 %v1217_v57, %v1053_v14  ;;  %v3223_v4 = vadd.f32 %v1219_v58, %v1055_v20  ;;  %v3225_v40 = vadd.f32 %v1221_v62, %v1057_v44 }
 0x278   : > { %v3227_v39 = vadd.f32 %v1223_v63, %v1059_v25  ;;  %v1289_v34 = vmul.f32 %v1288_v12, %v1288_v12  ;;  %vm1301_vm11 = vcmask 1040384   ;;  %v3469_v48 = vmov %v1288_v12 }
 0x279   : > { %v3239_v33 = vmov 0.0  }
 0x27a   : > { %v1294_v9 = vrot.slane %v1289_v34, %v2745_v8  ;;  %v1298_v42 = vrot.slane %v1289_v34, %v2742_v6 }
 0x27c   : > { %v1302_v7 = vsel %vm1301_vm11, %v1294_v9, 0.0  ;;  %v1303_v45 = vsel %vm1301_vm11, %v1298_v42, 0.0 }
 0x27d   : > { %v1304_v32 = vadd.f32 %v1303_v45, %v1302_v7 }
 0x27f   : > { %1305 = vadd.xlane.f32.xlu0 %v1304_v32 }
 0x30c   : > { %v1306_v46 = vpop.xlane.xlu0 %1305 }
 0x30d   : > { %v1307_v47 = vrot.slane %v1306_v46, 4 }
 0x30f   : > { %v1308_v20 = vadd.f32 %v1307_v47, %v1306_v46 }
 0x311   : > { %v1309_v59 = vrot.slane %v1308_v20, 2 }
 0x313   : > { %v1310_v44 = vadd.f32 %v1309_v59, %v1308_v20 }
 0x315   : > { %v1311_v1 = vrot.slane %v1310_v44, 1 }
 0x317   : > { %v1312_v25 = vadd.f32 %v1311_v1, %v1310_v44 }
 0x319   : > { %1804 = vpush %v1312_v25 }
 0x34a   : > { %s1805_s18 = spop %1804 }
 0x34b   : > { %v1314_v30 = vstv %s1805_s18  }
 0x34c LB: >> { %v1740_v50 = vpack.c.bf16 %v2812_v23, %v2810_v22  ;;  %v1742_v13 = vpack.c.bf16 %v3063_v29, %v3049_v60  ;;  %v1744_v52 = vpack.c.bf16 %v2816_v26, %v2814_v24  ;;  %v1746_v54 = vpack.c.bf16 %v3091_v16, %v3077_v37  ;;  %v3470_v56 = vld [vmem:[#allocation15_spill] sm:$0xff]  ;;  %v3471_v57 = vld [vmem:[#allocation42_spill] sm:$0xff]  ;;  %v3473_v36 = vld [vmem:[#allocation16_spill] sm:$0xff]  ;;  %s1320_s21 = sadd.s32 1, %s2306_s21   ;;  %s2306_s21 = sphi %s3241_s21, %s1320_s21   ;;  %v2302_v33 = vphi %v3239_v33, %v3504_v33   ;;  %v2298_v12 = vphi %v1288_v12, %v1475_v12   ;;  %v2294_v48 = vphi %v3469_v48, %v1505_v48   ;;  %v2290_v30 = vphi %v1314_v30, %v1500_v30  }
 0x34d   : >> { %v1748_v35 = vpack.c.bf16 %v3470_v56, %v2818_v27  ;;  %v3472_v58 = vld [vmem:[#allocation43_spill] sm:$0xff]  ;;  %v3474_v62 = vld [vmem:[#allocation17_spill] sm:$0xff]  ;;  %v1333_v0 = vrot.slane %v2294_v48, %v2742_v6  ;;  %v3475_v14 = vld [vmem:[#allocation44_spill] sm:$0xff]  ;;  %v1762_v1 = vpack.c.bf16 %v3187_v53, %v3185_v55  ;;  %p1317_p4 = scmp.ge.s32.totalorder %s1320_s21, 16  }
 0x34e   : >> { %1741 = vmatprep.subr.bf16.mxu0 %v1740_v50  ;;  %v1750_v61 = vpack.c.bf16 %v3472_v58, %v3471_v57  ;;  %v1752_v63 = vpack.c.bf16 %v3474_v62, %v3473_v36  ;;  %v3476_v34 = vld [vmem:[#allocation45_spill] sm:$0xff]  ;;  %v3477_v42 = vld [vmem:[#allocation18_spill] sm:$0xff]  ;;  %v3478_v7 = vld [vmem:[#allocation19_spill] sm:$0xff]  ;;  %v1770_v57 = vpack.c.bf16 %v3195_v2, %v3193_v28  ;;  %v1772_v58 = vpack.c.bf16 %v3199_v11, %v3197_v10 }
 0x34f   : >> { %1743 = vmatpush1.bf16.msra.mxu0 %v1742_v13  ;;  %v1754_v9 = vpack.c.bf16 %v3476_v34, %v3475_v14  ;;  %v1756_v45 = vpack.c.bf16 %v3478_v7, %v3477_v42  ;;  %1400 = vmatprep.mubr.f32.mxu0 %v1333_v0  ;;  %v3479_v32 = vld [vmem:[#allocation46_spill] sm:$0xff]  ;;  %v3480_v46 = vld [vmem:[#allocation47_spill] sm:$0xff]  ;;  %v3481_v20 = vld [vmem:[#allocation20_spill] sm:$0xff] }
 0x350   : >> { %1745 = vmatprep.subr.bf16.mxu0 %v1744_v52  ;;  %v1758_v47 = vpack.c.bf16 %v3480_v46, %v3479_v32  ;;  %v3482_v59 = vld [vmem:[#allocation21_spill] sm:$0xff]  ;;  %v3483_v25 = vld [vmem:[#allocation22_spill] sm:$0xff]  ;;  %v3484_v50 = vld [vmem:[#allocation23_spill] sm:$0xff]  ;;  %v1766_v52 = vpack.c.bf16 %v3191_v51, %v3189_v18  ;;  %v1784_v32 = vpack.c.bf16 %v3211_v49, %v3209_v17 }
 0x351   : >> { %v1760_v44 = vpack.c.bf16 %v3482_v59, %v3481_v20  ;;  %v1764_v13 = vpack.c.bf16 %v3484_v50, %v3483_v25  ;;  %v3486_v56 = vld [vmem:[#allocation25_spill] sm:$0xff]  ;;  %v3488_v36 = vld [vmem:[#allocation27_spill] sm:$0xff]  ;;  %v3489_v0 = vld [vmem:[#allocation28_spill] sm:$0xff]  ;;  %v1788_v59 = vpack.c.bf16 %v3215_v19, %v3213_v3  ;;  %v1792_v50 = vpack.c.bf16 %v3219_v31, %v3217_v5 }
 0x352   : >> { %v3490_v14 = vld [vmem:[#allocation29_spill] sm:$0xff]  ;;  %v3491_v42 = vld [vmem:[#allocation30_spill] sm:$0xff]  ;;  %v3492_v7 = vld [vmem:[#allocation31_spill] sm:$0xff] }
 0x353   : >> { %1747 = vmatpush1.bf16.msra.mxu0 %v1746_v54  ;;  %v3485_v54 = vld [vmem:[#allocation24_spill] sm:$0xff]  ;;  %v1778_v34 = vpack.c.bf16 %v3490_v14, %v3489_v0  ;;  %v1329_v0 = vrot.slane %v2294_v48, %v2745_v8 }
 0x354   : >> { %1749 = vmatprep.subr.bf16.mxu0 %v1748_v35  ;;  %v1768_v35 = vpack.c.bf16 %v3486_v56, %v3485_v54  ;;  %v3493_v46 = vld [vmem:[#allocation32_spill] sm:$0xff]  ;;  %v1796_v56 = vpack.c.bf16 %v3223_v4, %v3221_v43 }
 0x357   : >> { %1751 = vmatpush1.bf16.msra.mxu0 %v1750_v61  ;;  %v3487_v61 = vld [vmem:[#allocation26_spill] sm:$0xff] }
 0x358   : >> { %1753 = vmatprep.subr.bf16.mxu0 %v1752_v63  ;;  %v1774_v62 = vpack.c.bf16 %v3488_v36, %v3487_v61  ;;  %v1776_v63 = vpack.c.bf16 %v3203_v38, %v3201_v15  ;;  %v1800_v61 = vpack.c.bf16 %v3227_v39, %v3225_v40  ;;  %v3501_v36 = vld [vmem:[#allocation40_spill] sm:$0xff] }
 0x35b   : >> { %1755 = vmatpush1.bf16.msra.mxu0 %v1754_v9  ;;  %v1780_v9 = vpack.c.bf16 %v3207_v21, %v3205_v41 }
 0x35c   : >> { %1757 = vmatprep.subr.bf16.mxu0 %v1756_v45  ;;  %v1782_v45 = vpack.c.bf16 %v3492_v7, %v3491_v42  ;;  %v3503_v42 = vld [vmem:[#allocation13_spill] sm:$0xff] }
 0x35f   : >> { %1759 = vmatpush1.bf16.msra.mxu0 %v1758_v47  ;;  %v3494_v47 = vld [vmem:[#allocation33_spill] sm:$0xff] }
 0x360   : >> { %1761 = vmatprep.subr.bf16.mxu0 %v1760_v44  ;;  %v1786_v20 = vpack.c.bf16 %v3494_v47, %v3493_v46  ;;  %v3495_v44 = vld [vmem:[#allocation34_spill] sm:$0xff] }
 0x363   : >> { %1763 = vmatpush1.bf16.msra.mxu0 %v1762_v1  ;;  %v3496_v1 = vld [vmem:[#allocation35_spill] sm:$0xff] }
 0x364   : >> { %1765 = vmatprep.subr.bf16.mxu0 %v1764_v13  ;;  %v1790_v25 = vpack.c.bf16 %v3496_v1, %v3495_v44  ;;  %v3497_v13 = vld [vmem:[#allocation36_spill] sm:$0xff] }
 0x367   : >> { %1767 = vmatpush1.bf16.msra.mxu0 %v1766_v52  ;;  %v3498_v52 = vld [vmem:[#allocation37_spill] sm:$0xff] }
 0x368   : >> { %1769 = vmatprep.subr.bf16.mxu0 %v1768_v35  ;;  %v1794_v54 = vpack.c.bf16 %v3498_v52, %v3497_v13  ;;  %v3499_v35 = vld [vmem:[#allocation38_spill] sm:$0xff] }
 0x36b   : >> { %1771 = vmatpush1.bf16.msra.mxu0 %v1770_v57  ;;  %v3500_v57 = vld [vmem:[#allocation39_spill] sm:$0xff] }
 0x36c   : >> { %1773 = vmatprep.subr.bf16.mxu0 %v1772_v58  ;;  %v1798_v58 = vpack.c.bf16 %v3500_v57, %v3499_v35 }
 0x36f   : >> { %1775 = vmatpush1.bf16.msra.mxu0 %v1774_v62  ;;  %v3502_v62 = vld [vmem:[#allocation41_spill] sm:$0xff] }
 0x370   : >> { %1777 = vmatprep.subr.bf16.mxu0 %v1776_v63  ;;  %v1802_v63 = vpack.c.bf16 %v3502_v62, %v3501_v36 }
 0x373   : >> { %1779 = vmatpush1.bf16.msra.mxu0 %v1778_v34 }
 0x374   : >> { %1781 = vmatprep.subr.bf16.mxu0 %v1780_v9 }
 0x377   : >> { %1783 = vmatpush1.bf16.msra.mxu0 %v1782_v45 }
 0x378   : >> { %1785 = vmatprep.subr.bf16.mxu0 %v1784_v32 }
 0x37b   : >> { %1787 = vmatpush1.bf16.msra.mxu0 %v1786_v20 }
 0x37c   : >> { %1789 = vmatprep.subr.bf16.mxu0 %v1788_v59 }
 0x37f   : >> { %1791 = vmatpush1.bf16.msra.mxu0 %v1790_v25 }
 0x380   : >> { %1793 = vmatprep.subr.bf16.mxu0 %v1792_v50 }
 0x383   : >> { %1795 = vmatpush1.bf16.msra.mxu0 %v1794_v54 }
 0x384   : >> { %1797 = vmatprep.subr.bf16.mxu0 %v1796_v56 }
 0x387   : >> { %1799 = vmatpush1.bf16.msra.mxu0 %v1798_v58 }
 0x388   : >> { %1801 = vmatprep.subr.bf16.mxu0 %v1800_v61 }
 0x38b   : >> { %1803 = vmatpush1.bf16.msra.mxu0 %v1802_v63 }
 0x38e   : >> { %1401 = vmatmul.mubr.f32.vlgmr.msra.gmra.mrb[0].mxu0 %v1329_v0 }
 0x461   : >> { %v1402_v14 = vpop.f32.mrb[0].mxu0 }
 0x462   : >> { %v1404_v34 = vpop.f32.mrb[1].mxu0 }
 0x463   : >> { %v1409_v9 = vcombine.low %v1402_v14, %v1404_v34 }
 0x465   : >> { %v1416_v7 = vrot.slane %v1409_v9, %v3503_v42 }
 0x467   : >> { %v1423_v45 = vrot.slane %v1416_v7, %v3503_v42 }
 0x469   : >> { %v1425_v32 = vmul.f32 %v2294_v48, %v1423_v45 }
 0x46b   : >> { %v1430_v46 = vrot.slane %v1425_v32, %v2745_v8  ;;  %v1434_v47 = vrot.slane %v1425_v32, %v2742_v6 }
 0x46d   : >> { %v1437_v20 = vsel %vm1301_vm11, %v1430_v46, 0.0  ;;  %v1438_v59 = vsel %vm1301_vm11, %v1434_v47, 0.0 }
 0x46e   : >> { %v1439_v44 = vadd.f32 %v1438_v59, %v1437_v20 }
 0x470   : >> { %1440 = vadd.xlane.f32.xlu0 %v1439_v44 }
 0x4fd   : >> { %v1441_v1 = vpop.xlane.xlu0 %1440 }
 0x4fe   : >> { %v1442_v25 = vrot.slane %v1441_v1, 4 }
 0x500   : >> { %v1443_v50 = vadd.f32 %v1442_v25, %v1441_v1 }
 0x502   : >> { %v1444_v13 = vrot.slane %v1443_v50, 2 }
 0x504   : >> { %v1445_v52 = vadd.f32 %v1444_v13, %v1443_v50 }
 0x506   : >> { %v1446_v54 = vrot.slane %v1445_v52, 1 }
 0x508   : >> { %v1447_v56 = vadd.f32 %v1446_v54, %v1445_v52  ;;  %v1501_v52 = vadd.f32 1e-30, %v2290_v30 }
 0x50a   : >> { %1806 = vpush %v1447_v56 }
 0x53b   : >> { %s1807_s27 = spop %1806 }
 0x53c   : >> { %v1449_v35 = vstv %s1807_s27 }
 0x53d   : >> { %v1450_v57 = vadd.f32 1e-30, %v1449_v35 }
 0x53f   : >> { %2136 = vrcp.f32 %v1450_v57 }
 0x540   : >> { %2138 = vrcp.f32 %v1501_v52 }
 0x549   : >> { %v2137_v58 = vpop.eup %2136 }
 0x54a   : >> { %v1452_v61 = vmul.f32 %v2290_v30, %v2137_v58  ;;  %v2139_v54 = vpop.eup %2138 }
 0x54c   : >> { %v1453_v36 = vmul.f32 %v2294_v48, %v1452_v61  ;;  %v1455_v62 = vmul.f32 %v1452_v61, %v1402_v14  ;;  %v1456_v63 = vmul.f32 %v1452_v61, %v1404_v34 }
 0x54e   : >> { %v1454_v0 = vadd.f32 %v2302_v33, %v1453_v36   ;;  %v1459_v9 = vcombine.low %v1455_v62, %v1456_v63 }
 0x550   : >> { %v1466_v7 = vrot.slane %v1459_v9, %v3503_v42  ;;  %1506 = vst.msk [vmem:[#allocation9] sm:$0x3] (%p1317_p4), %vm2803_vm1, %v1454_v0 }
 0x552   : >> { %v1473_v45 = vrot.slane %v1466_v7, %v3503_v42 }
 0x554   : >> { %v1475_v12 = vsub.f32 %v2298_v12, %v1473_v45  }
 0x556   : >> { %v1476_v32 = vmul.f32 %v1475_v12, %v1475_v12 }
 0x558   : >> { %v1481_v46 = vrot.slane %v1476_v32, %v2745_v8  ;;  %v1485_v47 = vrot.slane %v1476_v32, %v2742_v6 }
 0x55a   : >> { %v1488_v20 = vsel %vm1301_vm11, %v1481_v46, 0.0  ;;  %v1489_v59 = vsel %vm1301_vm11, %v1485_v47, 0.0 }
 0x55b   : >> { %v1490_v14 = vadd.f32 %v1489_v59, %v1488_v20 }
 0x55d   : >> { %1491 = vadd.xlane.f32.xlu0 %v1490_v14 }
 0x5ea   : >> { %v1492_v34 = vpop.xlane.xlu0 %1491 }
 0x5eb   : >> { %v1493_v33 = vrot.slane %v1492_v34, 4 }
 0x5ed   : >> { %v1494_v44 = vadd.f32 %v1493_v33, %v1492_v34  ;;  %v3504_v33 = vmov %v1454_v0 }
 0x5ef   : >> { %v1495_v1 = vrot.slane %v1494_v44, 2 }
 0x5f1   : >> { %v1496_v25 = vadd.f32 %v1495_v1, %v1494_v44 }
 0x5f3   : >> { %v1497_v50 = vrot.slane %v1496_v25, 1 }
 0x5f5   : >> { %v1498_v13 = vadd.f32 %v1497_v50, %v1496_v25 }
 0x5f7   : >> { %1808 = vpush %v1498_v13 }
 0x628   : >> { %s1809_s24 = spop %1808  ;;  %1319 = sbr.rel (!%p1317_p4) target bundleno = 844 (0x34c), region = 85 }
 0x629   : >> { %v1500_v30 = vstv %s1809_s24  }
 0x62a   : >> { %v1503_v56 = vmul.f32 %v2139_v54, %v1500_v30 }
 0x62c   : >> { %v1504_v35 = vmul.f32 %v2294_v48, %v1503_v56 }
 0x62e   : >> { %v1505_v48 = vadd.f32 %v1504_v35, %v1475_v12  }
 0x62f PF: > { %p1831_p7 = scmp.eq.s32.totalorder %s2350_s13, 1  ;;  %s2315_s28 = smov [#allocation9]  }
 0x630   : > { %s1514_s12 = sshll.u32 %s2315_s28, 4  ;;  %s1515_s12 = int_to_ptr.vmem [resolvable:$true] %s1514_s12 }
 0x631   : > { %s2198_s22 = scalar_lea.vmem %s1515_s12, 32  ;;  %p2205_p10 = scmp.lt.s32.totalorder %s1515_s12, %s1515_s12 }
 0x632   : > { %p2199_p11 = scmp.ne.s32.totalorder %s1515_s12, %s2198_s22  ;;  %p2206_p0 = scmp.lt.s32.totalorder %s2198_s22, %s2198_s22 }
 0x634   : > { %p2200_p12 = pnand %p2199_p11, %p1831_p7  ;;  %p2207_p1 = por %p2206_p0, %p2205_p10 }
 0x636   : > { %p2201_p5 = pneg %p2200_p12 }
 0x638   : > { %p2208_p9 = pnand %p2207_p1, %p2201_p5 }
 0x63a   : > { %2211 = shalt.err (!%p2208_p9)
}
 0x63b   : > { %s2212_s3 = scalar_lea.hbm %s3396_s2, 32 }
 0x63c   : > { %p2213_p13 = scmp.ne.s32.totalorder %s3396_s2, %s2212_s3  ;;  %p2218_p3 = scmp.lt.u32.totalorder %s2212_s3, %s3396_s2 }
 0x63e   : > { %p2214_p2 = pnand %p2213_p13, %p1831_p7 }
 0x640   : > { %p2215_p8 = pneg %p2214_p2 }
 0x642   : > { %p2220_p6 = pnand %p2218_p3, %p2215_p8 }
 0x644   : > { %2223 = shalt.err (!%p2220_p6)
}
 0x645   : > { %1817 = dma.vmem_to_hbm [thread:$0]  (%p1831_p7), %s1515_s12, 32, %s3396_s2, [#allocation6]  }
 0x646   : > { %2269 = dma.done.wait (%p1831_p7), [#allocation6], 32  }
 0x647   : > { %2271 = vsyncadd (%p1831_p7), [#allocation6], 4294967264 }
 0x648 PF: > { %p14_p4 = scmp.ge.s32.totalorder %s2353_s14, 4   ;;  %s3506_s9 = smov %s2278_s10 }
 0x649   : > { %s3507_s10 = smov %s2282_s11  ;;  %s3508_s11 = smov %s2363_s17 }
 0x64a   : > { %s3509_s12 = smov %s2353_s14  ;;  %16 = sbr.rel (!%p14_p4) target bundleno = 5 (0x5), region = 96 }
 0x651   :  { %1527 = vsyncpa [#allocation5], 1 }
 0x652   :  { %1529 = vsyncpa [#allocation5 + $0x1], 1 }
 0x653   :  { %1530 = vsyncpa [#allocation8], 1 }
 0x654   :  { %1531 = vsyncpa [#allocation6], 1 }
 0x655   :  { %1533 = vsyncpa [#allocation6 + $0x1], 1 }

</bundles_post_ra>
